<compile_context>
chip_gen: v7x
topology: tpu7x:2x2x1
jax: 0.10.0
libtpu: 0.0.40
codegen_flags: <defaults>
</compile_context>

<pallas_src>
import functools
import math

import jax
import jax.numpy as jnp
from jax.experimental import pallas as pl
from jax.experimental.pallas import tpu as pltpu


_NEG = jnp.float32(-1e30)


# ------------------------------ kernel helpers ------------------------------ #

def _layernorm(x, gamma, beta, eps=1e-5):
    """Two-pass LayerNorm over the last axis (f32)."""
    mean = jnp.mean(x, axis=-1, keepdims=True)
    xc = x - mean
    var = jnp.mean(xc * xc, axis=-1, keepdims=True)
    return xc * jax.lax.rsqrt(var + eps) * gamma + beta


def _to_head_major(x2d, nhead, seq_len, dh):
    """[L, nhead*dh] -> [nhead, L, dh] via static lane slices + major-dim concat.

    Kept entirely in vregs (no VMEM scratch); the per-head lane extracts happen
    once here instead of once per matmul operand in a per-head loop.
    """
    parts = [x2d[:, h * dh:(h + 1) * dh].reshape(1, seq_len, dh)
             for h in range(nhead)]
    return jnp.concatenate(parts, axis=0)


# ----------------------------- fused stack kernel --------------------------- #

def _encoder_stack_kernel(x_ref, bias_ref,
                          wqkv_ref, bqkv_ref, wo_ref, bo_ref,
                          g1_ref, be1_ref, w1_ref, b1_ref,
                          w2_ref, b2_ref, g2_ref, be2_ref,
                          o_ref, *, num_layers, nhead, batch, seq_len):
    """All encoder layers for the whole batch, resident in VMEM/vregs."""
    B, L = batch, seq_len
    D = x_ref.shape[-1]
    dh = D // nhead

    x = x_ref[...].reshape(B * L, D)          # [B*L, D] f32 activations
    bias = bias_ref[...]                      # [B, 1, L] additive key-padding bias

    for l in range(num_layers):               # static layer loop: whole stack fused
        xb = x.astype(jnp.bfloat16)

        # --- fused QKV projection: one [B*L, D] x [D, 3D] MXU matmul ---
        qkv = (jnp.dot(xb, wqkv_ref[l], preferred_element_type=jnp.float32)
               + bqkv_ref[l])
        qb = qkv[:, :D].astype(jnp.bfloat16)          # 1/sqrt(dh) folded at init
        kb = qkv[:, D:2 * D].astype(jnp.bfloat16)
        vb = qkv[:, 2 * D:].astype(jnp.bfloat16)

        # --- self-attention: heads batched in 3-D dot_generals (no ctx scratch) ---
        ctx_parts = []
        for b in range(B):                    # static batch loop (B tiny)
            rows = slice(b * L, (b + 1) * L)
            q3 = _to_head_major(qb[rows], nhead, L, dh)        # [H, L, dh]
            k3 = _to_head_major(kb[rows], nhead, L, dh)
            v3 = _to_head_major(vb[rows], nhead, L, dh)
            s = jnp.einsum('hqd,hkd->hqk', q3, k3,
                           preferred_element_type=jnp.float32)  # [H, L, L]
            s = s + bias[b]                                     # [1, L] broadcast
            m = jnp.max(s, axis=-1, keepdims=True)
            p = jnp.exp(s - m)
            p = p * pl.reciprocal(jnp.sum(p, axis=-1, keepdims=True), approx=True)
            c3 = jnp.einsum('hqk,hkd->hqd', p.astype(jnp.bfloat16), v3,
                            preferred_element_type=jnp.float32)  # [H, L, dh]
            # reassemble heads along lanes, in-register
            ctx_parts.append(
                jnp.concatenate([c3[h] for h in range(nhead)], axis=-1))  # [L, D]
        ctx = jnp.concatenate(ctx_parts, axis=0)                  # [B*L, D] f32

        # --- single lane-dense output projection over concatenated heads ---
        attn = (jnp.dot(ctx.astype(jnp.bfloat16), wo_ref[l],
                        preferred_element_type=jnp.float32) + bo_ref[l])

        # --- residual + LayerNorm 1 (dropout == identity) ---
        y = _layernorm(x + attn, g1_ref[l], be1_ref[l])

        # --- feed-forward: Linear -> ReLU -> Linear ---
        hid = jnp.maximum(
            jnp.dot(y.astype(jnp.bfloat16), w1_ref[l],
                    preferred_element_type=jnp.float32) + b1_ref[l], 0.0)
        ffn = (jnp.dot(hid.astype(jnp.bfloat16), w2_ref[l],
                       preferred_element_type=jnp.float32) + b2_ref[l])

        # --- residual + LayerNorm 2 ---
        x = _layernorm(y + ffn, g2_ref[l], be2_ref[l])

    o_ref[...] = x.reshape(B, L, D)


# ------------------------------ kernel wrapper ------------------------------- #

def _resident(shape):
    """Whole-array block, resident across the (single-step) grid."""
    return pl.BlockSpec(shape, lambda i, _n=len(shape): (0,) * _n)


def transformer_encoder_forward(params, src, key_padding_mask, nhead):
    """src: [B, L, D] f32, key_padding_mask: [B, L] bool (True = padding)."""
    B, L, D = src.shape
    nl, _, dff = params["w1"].shape
    dh = D // nhead

    # tiny [B, 1, L] additive bias (no O(B*L^2) materialization)
    kpm_bias = jnp.where(key_padding_mask, _NEG, jnp.float32(0.0))
    kpm_bias = kpm_bias.astype(jnp.float32)[:, None, :]

    kernel = functools.partial(_encoder_stack_kernel,
                               num_layers=nl, nhead=nhead, batch=B, seq_len=L)

    order = ("wqkv", "bqkv", "wo", "bo", "g1", "be1",
             "w1", "b1", "w2", "b2", "g2", "be2")
    weights = [params[n] for n in order]

    # advisory cost estimate so XLA can schedule around the fused kernel
    M = B * L
    flops = nl * (2 * M * D * 3 * D            # QKV projection
                  + 4 * B * nhead * L * L * dh  # scores + P@V
                  + 2 * M * D * D               # output projection
                  + 4 * M * D * dff)            # FFN (two matmuls)
    transc = nl * B * nhead * L * L            # exp in softmax
    bytes_accessed = (2 * src.size * 4 + kpm_bias.size * 4
                      + sum(int(w.size) * w.dtype.itemsize for w in weights))

    return pl.pallas_call(
        kernel,
        out_shape=jax.ShapeDtypeStruct((B, L, D), jnp.float32),
        grid=(1,),
        in_specs=[_resident((B, L, D)),          # activations (whole batch: M=B*L)
                  _resident((B, 1, L))]          # key-padding bias
                 + [_resident(tuple(w.shape)) for w in weights],
        out_specs=_resident((B, L, D)),
        compiler_params=pltpu.CompilerParams(
            dimension_semantics=("arbitrary",),
            vmem_limit_bytes=32 * 1024 * 1024),
        cost_estimate=pl.CostEstimate(flops=int(flops),
                                      transcendentals=int(transc),
                                      bytes_accessed=int(bytes_accessed)),
    )(src, kpm_bias, *weights)


# ------------------------------ parameter init ------------------------------ #

def init_layer(key, d_model, nhead, d_ff):
    ks = jax.random.split(key, 12)
    s_in = 1.0 / math.sqrt(d_model)
    s_ff = 1.0 / math.sqrt(d_ff)
    scale = 1.0 / math.sqrt(d_model // nhead)

    def u(k, shape, bound):
        return jax.random.uniform(k, shape, jnp.float32, -bound, bound)

    wq = u(ks[0], (d_model, d_model), s_in)
    wk = u(ks[1], (d_model, d_model), s_in)
    wv = u(ks[2], (d_model, d_model), s_in)
    bq = 0.1 * jax.random.normal(ks[3], (1, d_model), jnp.float32)
    bk = 0.1 * jax.random.normal(ks[4], (1, d_model), jnp.float32)
    bv = 0.1 * jax.random.normal(ks[5], (1, d_model), jnp.float32)

    return dict(
        # fused QKV weight/bias; 1/sqrt(dh) folded into the Q column block.
        # matmul weights stored in bf16 (MXU-native, halves weight DMA bytes)
        wqkv=jnp.concatenate([wq * scale, wk, wv], axis=1).astype(jnp.bfloat16),
        bqkv=jnp.concatenate([bq * scale, bk, bv], axis=1),
        wo=u(ks[6], (d_model, d_model), s_in).astype(jnp.bfloat16),
        bo=0.1 * jax.random.normal(ks[7], (1, d_model), jnp.float32),
        g1=jnp.ones((1, d_model), jnp.float32),
        be1=jnp.zeros((1, d_model), jnp.float32),
        w1=u(ks[8], (d_model, d_ff), s_in).astype(jnp.bfloat16),
        b1=0.1 * jax.random.normal(ks[9], (1, d_ff), jnp.float32),
        w2=u(ks[10], (d_ff, d_model), s_ff).astype(jnp.bfloat16),
        b2=0.1 * jax.random.normal(ks[11], (1, d_model), jnp.float32),
        g2=jnp.ones((1, d_model), jnp.float32),
        be2=jnp.zeros((1, d_model), jnp.float32),
    )


def init_encoder(key, d_model, nhead, num_layers, d_ff):
    keys = jax.random.split(key, num_layers)
    layers = [init_layer(k, d_model, nhead, d_ff) for k in keys]
    # stack per-layer params on a leading layer axis for the fused-stack kernel
    return {name: jnp.stack([lp[name] for lp in layers], axis=0)
            for name in layers[0]}


# ------------------------ pure-JAX reference (sanity) ------------------------ #
# Mirrors the kernel's bf16-matmul / f32-accumulate recipe so the comparison
# checks the Pallas implementation rather than bf16-vs-f32 precision.

def _ref_layernorm(x, gamma, beta, eps=1e-5):
    mean = jnp.mean(x, axis=-1, keepdims=True)
    xc = x - mean
    var = jnp.mean(xc * xc, axis=-1, keepdims=True)
    return xc * jax.lax.rsqrt(var + eps) * gamma + beta


def _ref_layer(x, kpm_bias, p, nhead):
    B, L, D = x.shape
    dh = D // nhead
    xb = x.astype(jnp.bfloat16)
    qkv = jnp.einsum("bld,de->ble", xb, p["wqkv"],
                     preferred_element_type=jnp.float32) + p["bqkv"]
    qh = qkv[..., :D].astype(jnp.bfloat16).reshape(B, L, nhead, dh)
    kh = qkv[..., D:2 * D].astype(jnp.bfloat16).reshape(B, L, nhead, dh)
    vh = qkv[..., 2 * D:].astype(jnp.bfloat16).reshape(B, L, nhead, dh)
    s = jnp.einsum("bqhe,bkhe->bhqk", qh, kh,
                   preferred_element_type=jnp.float32)
    s = s + kpm_bias[:, :, None, :]                    # [B,1,1,L] broadcast
    w = jax.nn.softmax(s, axis=-1)
    ctx = jnp.einsum("bhqk,bkhe->bqhe", w.astype(jnp.bfloat16), vh,
                     preferred_element_type=jnp.float32).reshape(B, L, D)
    attn = jnp.einsum("bld,de->ble", ctx.astype(jnp.bfloat16), p["wo"],
                      preferred_element_type=jnp.float32) + p["bo"]
    y = _ref_layernorm(x + attn, p["g1"], p["be1"])
    h = jnp.maximum(
        jnp.einsum("bld,df->blf", y.astype(jnp.bfloat16), p["w1"],
                   preferred_element_type=jnp.float32) + p["b1"], 0.0)
    f = jnp.einsum("blf,fd->bld", h.astype(jnp.bfloat16), p["w2"],
                   preferred_element_type=jnp.float32) + p["b2"]
    return _ref_layernorm(y + f, p["g2"], p["be2"])


def transformer_encoder_ref(params, src, key_padding_mask, nhead):
    kpm_bias = jnp.where(key_padding_mask, _NEG, jnp.float32(0.0))
    kpm_bias = kpm_bias.astype(jnp.float32)[:, None, :]
    num_layers = params["wqkv"].shape[0]
    y = src
    for l in range(num_layers):
        lp = {k: v[l] for k, v in params.items()}
        y = _ref_layer(y, kpm_bias, lp, nhead)
    return y


# ---------------------------------- main ------------------------------------ #

if __name__ == "__main__":
    d_model, nhead = 32, 4
    num_encoder_layers = 2
    dim_feedforward = 64
    B, src_len = 2, 8

    key = jax.random.PRNGKey(0)
    k_param, k_src = jax.random.split(key)
    params = init_encoder(k_param, d_model, nhead, num_encoder_layers,
                          dim_feedforward)

    src = jax.random.normal(k_src, (B, src_len, d_model), jnp.float32)
    # key-padding mask (True = padding token, must not be attended to)
    key_padding_mask = jnp.zeros((B, src_len), jnp.bool_).at[1, -2:].set(True)

    # TODO(synk): dropout layers are treated as identity (eval-mode semantics).
    out = transformer_encoder_forward(params, src, key_padding_mask, nhead)
    out = jax.block_until_ready(out)
    assert out.shape == (B, src_len, d_model)

    ref = transformer_encoder_ref(params, src, key_padding_mask, nhead)
    if not jnp.allclose(out, ref, rtol=1e-2, atol=1e-2):
        err = float(jnp.max(jnp.abs(out - ref)))
        raise AssertionError(f"Pallas output mismatch vs reference (max err {err})")

    print("KERNEL_OK")
</pallas_src>

<mosaic_0001>
module attributes {stable_mosaic.version = 11 : i64} {
  func.func @_encoder_stack_kernel(%arg0: i32, %arg1: memref<2x8x32xf32, #tpu.memory_space<vmem>>, %arg2: memref<2x1x8xf32, #tpu.memory_space<vmem>>, %arg3: memref<2x32x96xbf16, #tpu.memory_space<vmem>>, %arg4: memref<2x1x96xf32, #tpu.memory_space<vmem>>, %arg5: memref<2x32x32xbf16, #tpu.memory_space<vmem>>, %arg6: memref<2x1x32xf32, #tpu.memory_space<vmem>>, %arg7: memref<2x1x32xf32, #tpu.memory_space<vmem>>, %arg8: memref<2x1x32xf32, #tpu.memory_space<vmem>>, %arg9: memref<2x32x64xbf16, #tpu.memory_space<vmem>>, %arg10: memref<2x1x64xf32, #tpu.memory_space<vmem>>, %arg11: memref<2x64x32xbf16, #tpu.memory_space<vmem>>, %arg12: memref<2x1x32xf32, #tpu.memory_space<vmem>>, %arg13: memref<2x1x32xf32, #tpu.memory_space<vmem>>, %arg14: memref<2x1x32xf32, #tpu.memory_space<vmem>>, %arg15: memref<2x8x32xf32, #tpu.memory_space<vmem>>) attributes {dimension_semantics = [#tpu.dimension_semantics<arbitrary>], iteration_bounds = array<i64: 1>, scalar_prefetch = 0 : i64, scratch_operands = 0 : i64, tpu.core_type = #tpu.core_type<tc>, window_params = [{pipeline_mode = #tpu.pipeline_mode<synchronous>, transform_indices = @transform_0, window_bounds = array<i64: 2, 8, 32>}, {pipeline_mode = #tpu.pipeline_mode<synchronous>, transform_indices = @transform_1, window_bounds = array<i64: 2, 1, 8>}, {pipeline_mode = #tpu.pipeline_mode<synchronous>, transform_indices = @transform_2, window_bounds = array<i64: 2, 32, 96>}, {pipeline_mode = #tpu.pipeline_mode<synchronous>, transform_indices = @transform_3, window_bounds = array<i64: 2, 1, 96>}, {pipeline_mode = #tpu.pipeline_mode<synchronous>, transform_indices = @transform_4, window_bounds = array<i64: 2, 32, 32>}, {pipeline_mode = #tpu.pipeline_mode<synchronous>, transform_indices = @transform_5, window_bounds = array<i64: 2, 1, 32>}, {pipeline_mode = #tpu.pipeline_mode<synchronous>, transform_indices = @transform_6, window_bounds = array<i64: 2, 1, 32>}, {pipeline_mode = #tpu.pipeline_mode<synchronous>, transform_indices = @transform_7, window_bounds = array<i64: 2, 1, 32>}, {pipeline_mode = #tpu.pipeline_mode<synchronous>, transform_indices = @transform_8, window_bounds = array<i64: 2, 32, 64>}, {pipeline_mode = #tpu.pipeline_mode<synchronous>, transform_indices = @transform_9, window_bounds = array<i64: 2, 1, 64>}, {pipeline_mode = #tpu.pipeline_mode<synchronous>, transform_indices = @transform_10, window_bounds = array<i64: 2, 64, 32>}, {pipeline_mode = #tpu.pipeline_mode<synchronous>, transform_indices = @transform_11, window_bounds = array<i64: 2, 1, 32>}, {pipeline_mode = #tpu.pipeline_mode<synchronous>, transform_indices = @transform_12, window_bounds = array<i64: 2, 1, 32>}, {pipeline_mode = #tpu.pipeline_mode<synchronous>, transform_indices = @transform_13, window_bounds = array<i64: 2, 1, 32>}, {pipeline_mode = #tpu.pipeline_mode<synchronous>, transform_indices = @transform_14, window_bounds = array<i64: 2, 8, 32>}]} {
    %c0 = arith.constant 0 : index
    %c0_0 = arith.constant 0 : index
    %c0_1 = arith.constant 0 : index
    %0 = vector.load %arg1[%c0, %c0_0, %c0_1] : memref<2x8x32xf32, #tpu.memory_space<vmem>>, vector<2x8x32xf32>
    %1 = vector.shape_cast %0 : vector<2x8x32xf32> to vector<16x32xf32>
    %c0_2 = arith.constant 0 : index
    %c0_3 = arith.constant 0 : index
    %c0_4 = arith.constant 0 : index
    %2 = vector.load %arg2[%c0_2, %c0_3, %c0_4] : memref<2x1x8xf32, #tpu.memory_space<vmem>>, vector<2x1x8xf32>
    %3 = arith.truncf %1 : vector<16x32xf32> to vector<16x32xbf16>
    %c0_5 = arith.constant 0 : index
    %c0_6 = arith.constant 0 : index
    %c0_7 = arith.constant 0 : index
    %4 = vector.load %arg3[%c0_5, %c0_6, %c0_7] : memref<2x32x96xbf16, #tpu.memory_space<vmem>>, vector<1x32x96xbf16>
    %5 = vector.shape_cast %4 : vector<1x32x96xbf16> to vector<32x96xbf16>
    %cst = arith.constant dense<0.000000e+00> : vector<16x96xf32>
    %6 = tpu.matmul %3, %5, %cst {dimension_numbers = #tpu.dot_dimension_numbers<[1], [0], [0], [1], [0, 0, 1, 1], [], []>} : vector<16x32xbf16>, vector<32x96xbf16>, vector<16x96xf32> -> vector<16x96xf32>
    %c0_8 = arith.constant 0 : index
    %c0_9 = arith.constant 0 : index
    %c0_10 = arith.constant 0 : index
    %7 = vector.load %arg4[%c0_8, %c0_9, %c0_10] : memref<2x1x96xf32, #tpu.memory_space<vmem>>, vector<1x1x96xf32>
    %8 = vector.shape_cast %7 : vector<1x1x96xf32> to vector<1x96xf32>
    %9 = vector.broadcast %8 : vector<1x96xf32> to vector<16x96xf32>
    %10 = arith.addf %6, %9 : vector<16x96xf32>
    %11 = vector.extract_strided_slice %10 {offsets = [0, 0], sizes = [16, 32], strides = [1, 1]} : vector<16x96xf32> to vector<16x32xf32>
    %12 = arith.truncf %11 : vector<16x32xf32> to vector<16x32xbf16>
    %13 = vector.extract_strided_slice %10 {offsets = [0, 32], sizes = [16, 32], strides = [1, 1]} : vector<16x96xf32> to vector<16x32xf32>
    %14 = arith.truncf %13 : vector<16x32xf32> to vector<16x32xbf16>
    %15 = vector.extract_strided_slice %10 {offsets = [0, 64], sizes = [16, 32], strides = [1, 1]} : vector<16x96xf32> to vector<16x32xf32>
    %16 = arith.truncf %15 : vector<16x32xf32> to vector<16x32xbf16>
    %17 = vector.extract_strided_slice %12 {offsets = [0, 0], sizes = [8, 32], strides = [1, 1]} : vector<16x32xbf16> to vector<8x32xbf16>
    %18 = vector.extract_strided_slice %17 {offsets = [0, 0], sizes = [8, 8], strides = [1, 1]} : vector<8x32xbf16> to vector<8x8xbf16>
    %19 = vector.shape_cast %18 : vector<8x8xbf16> to vector<1x8x8xbf16>
    %20 = vector.extract_strided_slice %17 {offsets = [0, 8], sizes = [8, 8], strides = [1, 1]} : vector<8x32xbf16> to vector<8x8xbf16>
    %21 = vector.shape_cast %20 : vector<8x8xbf16> to vector<1x8x8xbf16>
    %22 = vector.extract_strided_slice %17 {offsets = [0, 16], sizes = [8, 8], strides = [1, 1]} : vector<8x32xbf16> to vector<8x8xbf16>
    %23 = vector.shape_cast %22 : vector<8x8xbf16> to vector<1x8x8xbf16>
    %24 = vector.extract_strided_slice %17 {offsets = [0, 24], sizes = [8, 8], strides = [1, 1]} : vector<8x32xbf16> to vector<8x8xbf16>
    %25 = vector.shape_cast %24 : vector<8x8xbf16> to vector<1x8x8xbf16>
    %26 = tpu.concatenate %19, %21, %23, %25 in 0 : vector<1x8x8xbf16>, vector<1x8x8xbf16>, vector<1x8x8xbf16>, vector<1x8x8xbf16> -> vector<4x8x8xbf16>
    %27 = vector.extract_strided_slice %14 {offsets = [0, 0], sizes = [8, 32], strides = [1, 1]} : vector<16x32xbf16> to vector<8x32xbf16>
    %28 = vector.extract_strided_slice %27 {offsets = [0, 0], sizes = [8, 8], strides = [1, 1]} : vector<8x32xbf16> to vector<8x8xbf16>
    %29 = vector.shape_cast %28 : vector<8x8xbf16> to vector<1x8x8xbf16>
    %30 = vector.extract_strided_slice %27 {offsets = [0, 8], sizes = [8, 8], strides = [1, 1]} : vector<8x32xbf16> to vector<8x8xbf16>
    %31 = vector.shape_cast %30 : vector<8x8xbf16> to vector<1x8x8xbf16>
    %32 = vector.extract_strided_slice %27 {offsets = [0, 16], sizes = [8, 8], strides = [1, 1]} : vector<8x32xbf16> to vector<8x8xbf16>
    %33 = vector.shape_cast %32 : vector<8x8xbf16> to vector<1x8x8xbf16>
    %34 = vector.extract_strided_slice %27 {offsets = [0, 24], sizes = [8, 8], strides = [1, 1]} : vector<8x32xbf16> to vector<8x8xbf16>
    %35 = vector.shape_cast %34 : vector<8x8xbf16> to vector<1x8x8xbf16>
    %36 = tpu.concatenate %29, %31, %33, %35 in 0 : vector<1x8x8xbf16>, vector<1x8x8xbf16>, vector<1x8x8xbf16>, vector<1x8x8xbf16> -> vector<4x8x8xbf16>
    %37 = vector.extract_strided_slice %16 {offsets = [0, 0], sizes = [8, 32], strides = [1, 1]} : vector<16x32xbf16> to vector<8x32xbf16>
    %38 = vector.extract_strided_slice %37 {offsets = [0, 0], sizes = [8, 8], strides = [1, 1]} : vector<8x32xbf16> to vector<8x8xbf16>
    %39 = vector.shape_cast %38 : vector<8x8xbf16> to vector<1x8x8xbf16>
    %40 = vector.extract_strided_slice %37 {offsets = [0, 8], sizes = [8, 8], strides = [1, 1]} : vector<8x32xbf16> to vector<8x8xbf16>
    %41 = vector.shape_cast %40 : vector<8x8xbf16> to vector<1x8x8xbf16>
    %42 = vector.extract_strided_slice %37 {offsets = [0, 16], sizes = [8, 8], strides = [1, 1]} : vector<8x32xbf16> to vector<8x8xbf16>
    %43 = vector.shape_cast %42 : vector<8x8xbf16> to vector<1x8x8xbf16>
    %44 = vector.extract_strided_slice %37 {offsets = [0, 24], sizes = [8, 8], strides = [1, 1]} : vector<8x32xbf16> to vector<8x8xbf16>
    %45 = vector.shape_cast %44 : vector<8x8xbf16> to vector<1x8x8xbf16>
    %46 = tpu.concatenate %39, %41, %43, %45 in 0 : vector<1x8x8xbf16>, vector<1x8x8xbf16>, vector<1x8x8xbf16>, vector<1x8x8xbf16> -> vector<4x8x8xbf16>
    "tpu.trace_start"() <{level = 10 : i32, message = "hqd,hkd->hqk"}> : () -> ()
    %cst_11 = arith.constant dense<0.000000e+00> : vector<4x8x8xf32>
    %47 = tpu.matmul %26, %36, %cst_11 {dimension_numbers = #tpu.dot_dimension_numbers<[2], [2], [1], [1], [0, 0, 0, 1, 1, 1], [0], [0]>} : vector<4x8x8xbf16>, vector<4x8x8xbf16>, vector<4x8x8xf32> -> vector<4x8x8xf32>
    "tpu.trace_stop"() : () -> ()
    %48 = vector.extract_strided_slice %2 {offsets = [0, 0, 0], sizes = [1, 1, 8], strides = [1, 1, 1]} : vector<2x1x8xf32> to vector<1x1x8xf32>
    %49 = vector.shape_cast %48 : vector<1x1x8xf32> to vector<1x8xf32>
    %50 = vector.shape_cast %49 : vector<1x8xf32> to vector<1x1x8xf32>
    %51 = vector.broadcast %50 : vector<1x1x8xf32> to vector<4x8x8xf32>
    %52 = arith.addf %47, %51 : vector<4x8x8xf32>
    %cst_12 = arith.constant dense<0xFF800000> : vector<4x8xf32>
    %53 = vector.multi_reduction <maximumf>, %52, %cst_12 [2] : vector<4x8x8xf32> to vector<4x8xf32>
    %54 = vector.shape_cast %53 : vector<4x8xf32> to vector<4x8x1xf32>
    %55 = vector.broadcast %54 : vector<4x8x1xf32> to vector<4x8x8xf32>
    %56 = arith.subf %52, %55 : vector<4x8x8xf32>
    %57 = math.exp %56 : vector<4x8x8xf32>
    %cst_13 = arith.constant dense<0.000000e+00> : vector<4x8xf32>
    %58 = vector.multi_reduction <add>, %57, %cst_13 [2] : vector<4x8x8xf32> to vector<4x8xf32>
    %59 = vector.shape_cast %58 : vector<4x8xf32> to vector<4x8x1xf32>
    %60 = tpu.reciprocal %59 {approx = true} : vector<4x8x1xf32> -> vector<4x8x1xf32>
    %61 = vector.broadcast %60 : vector<4x8x1xf32> to vector<4x8x8xf32>
    %62 = arith.mulf %57, %61 : vector<4x8x8xf32>
    %63 = arith.truncf %62 : vector<4x8x8xf32> to vector<4x8x8xbf16>
    "tpu.trace_start"() <{level = 10 : i32, message = "hqk,hkd->hqd"}> : () -> ()
    %cst_14 = arith.constant dense<0.000000e+00> : vector<4x8x8xf32>
    %64 = tpu.matmul %63, %46, %cst_14 {dimension_numbers = #tpu.dot_dimension_numbers<[2], [1], [1], [2], [0, 0, 0, 1, 1, 2], [0], [0]>} : vector<4x8x8xbf16>, vector<4x8x8xbf16>, vector<4x8x8xf32> -> vector<4x8x8xf32>
    "tpu.trace_stop"() : () -> ()
    %65 = vector.extract_strided_slice %64 {offsets = [0, 0, 0], sizes = [1, 8, 8], strides = [1, 1, 1]} : vector<4x8x8xf32> to vector<1x8x8xf32>
    %66 = vector.shape_cast %65 : vector<1x8x8xf32> to vector<8x8xf32>
    %67 = vector.extract_strided_slice %64 {offsets = [1, 0, 0], sizes = [1, 8, 8], strides = [1, 1, 1]} : vector<4x8x8xf32> to vector<1x8x8xf32>
    %68 = vector.shape_cast %67 : vector<1x8x8xf32> to vector<8x8xf32>
    %69 = vector.extract_strided_slice %64 {offsets = [2, 0, 0], sizes = [1, 8, 8], strides = [1, 1, 1]} : vector<4x8x8xf32> to vector<1x8x8xf32>
    %70 = vector.shape_cast %69 : vector<1x8x8xf32> to vector<8x8xf32>
    %71 = vector.extract_strided_slice %64 {offsets = [3, 0, 0], sizes = [1, 8, 8], strides = [1, 1, 1]} : vector<4x8x8xf32> to vector<1x8x8xf32>
    %72 = vector.shape_cast %71 : vector<1x8x8xf32> to vector<8x8xf32>
    %73 = tpu.concatenate %66, %68, %70, %72 in 1 : vector<8x8xf32>, vector<8x8xf32>, vector<8x8xf32>, vector<8x8xf32> -> vector<8x32xf32>
    %74 = vector.extract_strided_slice %12 {offsets = [8, 0], sizes = [8, 32], strides = [1, 1]} : vector<16x32xbf16> to vector<8x32xbf16>
    %75 = vector.extract_strided_slice %74 {offsets = [0, 0], sizes = [8, 8], strides = [1, 1]} : vector<8x32xbf16> to vector<8x8xbf16>
    %76 = vector.shape_cast %75 : vector<8x8xbf16> to vector<1x8x8xbf16>
    %77 = vector.extract_strided_slice %74 {offsets = [0, 8], sizes = [8, 8], strides = [1, 1]} : vector<8x32xbf16> to vector<8x8xbf16>
    %78 = vector.shape_cast %77 : vector<8x8xbf16> to vector<1x8x8xbf16>
    %79 = vector.extract_strided_slice %74 {offsets = [0, 16], sizes = [8, 8], strides = [1, 1]} : vector<8x32xbf16> to vector<8x8xbf16>
    %80 = vector.shape_cast %79 : vector<8x8xbf16> to vector<1x8x8xbf16>
    %81 = vector.extract_strided_slice %74 {offsets = [0, 24], sizes = [8, 8], strides = [1, 1]} : vector<8x32xbf16> to vector<8x8xbf16>
    %82 = vector.shape_cast %81 : vector<8x8xbf16> to vector<1x8x8xbf16>
    %83 = tpu.concatenate %76, %78, %80, %82 in 0 : vector<1x8x8xbf16>, vector<1x8x8xbf16>, vector<1x8x8xbf16>, vector<1x8x8xbf16> -> vector<4x8x8xbf16>
    %84 = vector.extract_strided_slice %14 {offsets = [8, 0], sizes = [8, 32], strides = [1, 1]} : vector<16x32xbf16> to vector<8x32xbf16>
    %85 = vector.extract_strided_slice %84 {offsets = [0, 0], sizes = [8, 8], strides = [1, 1]} : vector<8x32xbf16> to vector<8x8xbf16>
    %86 = vector.shape_cast %85 : vector<8x8xbf16> to vector<1x8x8xbf16>
    %87 = vector.extract_strided_slice %84 {offsets = [0, 8], sizes = [8, 8], strides = [1, 1]} : vector<8x32xbf16> to vector<8x8xbf16>
    %88 = vector.shape_cast %87 : vector<8x8xbf16> to vector<1x8x8xbf16>
    %89 = vector.extract_strided_slice %84 {offsets = [0, 16], sizes = [8, 8], strides = [1, 1]} : vector<8x32xbf16> to vector<8x8xbf16>
    %90 = vector.shape_cast %89 : vector<8x8xbf16> to vector<1x8x8xbf16>
    %91 = vector.extract_strided_slice %84 {offsets = [0, 24], sizes = [8, 8], strides = [1, 1]} : vector<8x32xbf16> to vector<8x8xbf16>
    %92 = vector.shape_cast %91 : vector<8x8xbf16> to vector<1x8x8xbf16>
    %93 = tpu.concatenate %86, %88, %90, %92 in 0 : vector<1x8x8xbf16>, vector<1x8x8xbf16>, vector<1x8x8xbf16>, vector<1x8x8xbf16> -> vector<4x8x8xbf16>
    %94 = vector.extract_strided_slice %16 {offsets = [8, 0], sizes = [8, 32], strides = [1, 1]} : vector<16x32xbf16> to vector<8x32xbf16>
    %95 = vector.extract_strided_slice %94 {offsets = [0, 0], sizes = [8, 8], strides = [1, 1]} : vector<8x32xbf16> to vector<8x8xbf16>
    %96 = vector.shape_cast %95 : vector<8x8xbf16> to vector<1x8x8xbf16>
    %97 = vector.extract_strided_slice %94 {offsets = [0, 8], sizes = [8, 8], strides = [1, 1]} : vector<8x32xbf16> to vector<8x8xbf16>
    %98 = vector.shape_cast %97 : vector<8x8xbf16> to vector<1x8x8xbf16>
    %99 = vector.extract_strided_slice %94 {offsets = [0, 16], sizes = [8, 8], strides = [1, 1]} : vector<8x32xbf16> to vector<8x8xbf16>
    %100 = vector.shape_cast %99 : vector<8x8xbf16> to vector<1x8x8xbf16>
    %101 = vector.extract_strided_slice %94 {offsets = [0, 24], sizes = [8, 8], strides = [1, 1]} : vector<8x32xbf16> to vector<8x8xbf16>
    %102 = vector.shape_cast %101 : vector<8x8xbf16> to vector<1x8x8xbf16>
    %103 = tpu.concatenate %96, %98, %100, %102 in 0 : vector<1x8x8xbf16>, vector<1x8x8xbf16>, vector<1x8x8xbf16>, vector<1x8x8xbf16> -> vector<4x8x8xbf16>
    "tpu.trace_start"() <{level = 10 : i32, message = "hqd,hkd->hqk"}> : () -> ()
    %cst_15 = arith.constant dense<0.000000e+00> : vector<4x8x8xf32>
    %104 = tpu.matmul %83, %93, %cst_15 {dimension_numbers = #tpu.dot_dimension_numbers<[2], [2], [1], [1], [0, 0, 0, 1, 1, 1], [0], [0]>} : vector<4x8x8xbf16>, vector<4x8x8xbf16>, vector<4x8x8xf32> -> vector<4x8x8xf32>
    "tpu.trace_stop"() : () -> ()
    %105 = vector.extract_strided_slice %2 {offsets = [1, 0, 0], sizes = [1, 1, 8], strides = [1, 1, 1]} : vector<2x1x8xf32> to vector<1x1x8xf32>
    %106 = vector.shape_cast %105 : vector<1x1x8xf32> to vector<1x8xf32>
    %107 = vector.shape_cast %106 : vector<1x8xf32> to vector<1x1x8xf32>
    %108 = vector.broadcast %107 : vector<1x1x8xf32> to vector<4x8x8xf32>
    %109 = arith.addf %104, %108 : vector<4x8x8xf32>
    %cst_16 = arith.constant dense<0xFF800000> : vector<4x8xf32>
    %110 = vector.multi_reduction <maximumf>, %109, %cst_16 [2] : vector<4x8x8xf32> to vector<4x8xf32>
    %111 = vector.shape_cast %110 : vector<4x8xf32> to vector<4x8x1xf32>
    %112 = vector.broadcast %111 : vector<4x8x1xf32> to vector<4x8x8xf32>
    %113 = arith.subf %109, %112 : vector<4x8x8xf32>
    %114 = math.exp %113 : vector<4x8x8xf32>
    %cst_17 = arith.constant dense<0.000000e+00> : vector<4x8xf32>
    %115 = vector.multi_reduction <add>, %114, %cst_17 [2] : vector<4x8x8xf32> to vector<4x8xf32>
    %116 = vector.shape_cast %115 : vector<4x8xf32> to vector<4x8x1xf32>
    %117 = tpu.reciprocal %116 {approx = true} : vector<4x8x1xf32> -> vector<4x8x1xf32>
    %118 = vector.broadcast %117 : vector<4x8x1xf32> to vector<4x8x8xf32>
    %119 = arith.mulf %114, %118 : vector<4x8x8xf32>
    %120 = arith.truncf %119 : vector<4x8x8xf32> to vector<4x8x8xbf16>
    "tpu.trace_start"() <{level = 10 : i32, message = "hqk,hkd->hqd"}> : () -> ()
    %cst_18 = arith.constant dense<0.000000e+00> : vector<4x8x8xf32>
    %121 = tpu.matmul %120, %103, %cst_18 {dimension_numbers = #tpu.dot_dimension_numbers<[2], [1], [1], [2], [0, 0, 0, 1, 1, 2], [0], [0]>} : vector<4x8x8xbf16>, vector<4x8x8xbf16>, vector<4x8x8xf32> -> vector<4x8x8xf32>
    "tpu.trace_stop"() : () -> ()
    %122 = vector.extract_strided_slice %121 {offsets = [0, 0, 0], sizes = [1, 8, 8], strides = [1, 1, 1]} : vector<4x8x8xf32> to vector<1x8x8xf32>
    %123 = vector.shape_cast %122 : vector<1x8x8xf32> to vector<8x8xf32>
    %124 = vector.extract_strided_slice %121 {offsets = [1, 0, 0], sizes = [1, 8, 8], strides = [1, 1, 1]} : vector<4x8x8xf32> to vector<1x8x8xf32>
    %125 = vector.shape_cast %124 : vector<1x8x8xf32> to vector<8x8xf32>
    %126 = vector.extract_strided_slice %121 {offsets = [2, 0, 0], sizes = [1, 8, 8], strides = [1, 1, 1]} : vector<4x8x8xf32> to vector<1x8x8xf32>
    %127 = vector.shape_cast %126 : vector<1x8x8xf32> to vector<8x8xf32>
    %128 = vector.extract_strided_slice %121 {offsets = [3, 0, 0], sizes = [1, 8, 8], strides = [1, 1, 1]} : vector<4x8x8xf32> to vector<1x8x8xf32>
    %129 = vector.shape_cast %128 : vector<1x8x8xf32> to vector<8x8xf32>
    %130 = tpu.concatenate %123, %125, %127, %129 in 1 : vector<8x8xf32>, vector<8x8xf32>, vector<8x8xf32>, vector<8x8xf32> -> vector<8x32xf32>
    %131 = tpu.concatenate %73, %130 in 0 : vector<8x32xf32>, vector<8x32xf32> -> vector<16x32xf32>
    %132 = arith.truncf %131 : vector<16x32xf32> to vector<16x32xbf16>
    %c0_19 = arith.constant 0 : index
    %c0_20 = arith.constant 0 : index
    %c0_21 = arith.constant 0 : index
    %133 = vector.load %arg5[%c0_19, %c0_20, %c0_21] : memref<2x32x32xbf16, #tpu.memory_space<vmem>>, vector<1x32x32xbf16>
    %134 = vector.shape_cast %133 : vector<1x32x32xbf16> to vector<32x32xbf16>
    %cst_22 = arith.constant dense<0.000000e+00> : vector<16x32xf32>
    %135 = tpu.matmul %132, %134, %cst_22 {dimension_numbers = #tpu.dot_dimension_numbers<[1], [0], [0], [1], [0, 0, 1, 1], [], []>} : vector<16x32xbf16>, vector<32x32xbf16>, vector<16x32xf32> -> vector<16x32xf32>
    %c0_23 = arith.constant 0 : index
    %c0_24 = arith.constant 0 : index
    %c0_25 = arith.constant 0 : index
    %136 = vector.load %arg6[%c0_23, %c0_24, %c0_25] : memref<2x1x32xf32, #tpu.memory_space<vmem>>, vector<1x1x32xf32>
    %137 = vector.shape_cast %136 : vector<1x1x32xf32> to vector<1x32xf32>
    %138 = vector.broadcast %137 : vector<1x32xf32> to vector<16x32xf32>
    %139 = arith.addf %135, %138 : vector<16x32xf32>
    %140 = arith.addf %1, %139 : vector<16x32xf32>
    %c0_26 = arith.constant 0 : index
    %c0_27 = arith.constant 0 : index
    %c0_28 = arith.constant 0 : index
    %141 = vector.load %arg7[%c0_26, %c0_27, %c0_28] : memref<2x1x32xf32, #tpu.memory_space<vmem>>, vector<1x1x32xf32>
    %142 = vector.shape_cast %141 : vector<1x1x32xf32> to vector<1x32xf32>
    %c0_29 = arith.constant 0 : index
    %c0_30 = arith.constant 0 : index
    %c0_31 = arith.constant 0 : index
    %143 = vector.load %arg8[%c0_29, %c0_30, %c0_31] : memref<2x1x32xf32, #tpu.memory_space<vmem>>, vector<1x1x32xf32>
    %144 = vector.shape_cast %143 : vector<1x1x32xf32> to vector<1x32xf32>
    %cst_32 = arith.constant dense<0.000000e+00> : vector<16xf32>
    %145 = vector.multi_reduction <add>, %140, %cst_32 [1] : vector<16x32xf32> to vector<16xf32>
    %146 = vector.shape_cast %145 : vector<16xf32> to vector<16x1xf32>
    %cst_33 = arith.constant 3.200000e+01 : f32
    %147 = vector.broadcast %cst_33 : f32 to vector<16x1xf32>
    %148 = arith.divf %146, %147 : vector<16x1xf32>
    %149 = vector.broadcast %148 : vector<16x1xf32> to vector<16x32xf32>
    %150 = arith.subf %140, %149 : vector<16x32xf32>
    %151 = arith.mulf %150, %150 : vector<16x32xf32>
    %cst_34 = arith.constant dense<0.000000e+00> : vector<16xf32>
    %152 = vector.multi_reduction <add>, %151, %cst_34 [1] : vector<16x32xf32> to vector<16xf32>
    %153 = vector.shape_cast %152 : vector<16xf32> to vector<16x1xf32>
    %cst_35 = arith.constant 3.200000e+01 : f32
    %154 = vector.broadcast %cst_35 : f32 to vector<16x1xf32>
    %155 = arith.divf %153, %154 : vector<16x1xf32>
    %cst_36 = arith.constant 9.99999974E-6 : f32
    %156 = vector.broadcast %cst_36 : f32 to vector<16x1xf32>
    %157 = arith.addf %155, %156 : vector<16x1xf32>
    %158 = math.rsqrt %157 : vector<16x1xf32>
    %159 = vector.broadcast %158 : vector<16x1xf32> to vector<16x32xf32>
    %160 = arith.mulf %150, %159 : vector<16x32xf32>
    %161 = vector.broadcast %142 : vector<1x32xf32> to vector<16x32xf32>
    %162 = arith.mulf %160, %161 : vector<16x32xf32>
    %163 = vector.broadcast %144 : vector<1x32xf32> to vector<16x32xf32>
    %164 = arith.addf %162, %163 : vector<16x32xf32>
    %165 = arith.truncf %164 : vector<16x32xf32> to vector<16x32xbf16>
    %c0_37 = arith.constant 0 : index
    %c0_38 = arith.constant 0 : index
    %c0_39 = arith.constant 0 : index
    %166 = vector.load %arg9[%c0_37, %c0_38, %c0_39] : memref<2x32x64xbf16, #tpu.memory_space<vmem>>, vector<1x32x64xbf16>
    %167 = vector.shape_cast %166 : vector<1x32x64xbf16> to vector<32x64xbf16>
    %cst_40 = arith.constant dense<0.000000e+00> : vector<16x64xf32>
    %168 = tpu.matmul %165, %167, %cst_40 {dimension_numbers = #tpu.dot_dimension_numbers<[1], [0], [0], [1], [0, 0, 1, 1], [], []>} : vector<16x32xbf16>, vector<32x64xbf16>, vector<16x64xf32> -> vector<16x64xf32>
    %c0_41 = arith.constant 0 : index
    %c0_42 = arith.constant 0 : index
    %c0_43 = arith.constant 0 : index
    %169 = vector.load %arg10[%c0_41, %c0_42, %c0_43] : memref<2x1x64xf32, #tpu.memory_space<vmem>>, vector<1x1x64xf32>
    %170 = vector.shape_cast %169 : vector<1x1x64xf32> to vector<1x64xf32>
    %171 = vector.broadcast %170 : vector<1x64xf32> to vector<16x64xf32>
    %172 = arith.addf %168, %171 : vector<16x64xf32>
    %cst_44 = arith.constant 0.000000e+00 : f32
    %173 = vector.broadcast %cst_44 : f32 to vector<16x64xf32>
    %174 = arith.maximumf %172, %173 : vector<16x64xf32>
    %175 = arith.truncf %174 : vector<16x64xf32> to vector<16x64xbf16>
    %c0_45 = arith.constant 0 : index
    %c0_46 = arith.constant 0 : index
    %c0_47 = arith.constant 0 : index
    %176 = vector.load %arg11[%c0_45, %c0_46, %c0_47] : memref<2x64x32xbf16, #tpu.memory_space<vmem>>, vector<1x64x32xbf16>
    %177 = vector.shape_cast %176 : vector<1x64x32xbf16> to vector<64x32xbf16>
    %cst_48 = arith.constant dense<0.000000e+00> : vector<16x32xf32>
    %178 = tpu.matmul %175, %177, %cst_48 {dimension_numbers = #tpu.dot_dimension_numbers<[1], [0], [0], [1], [0, 0, 1, 1], [], []>} : vector<16x64xbf16>, vector<64x32xbf16>, vector<16x32xf32> -> vector<16x32xf32>
    %c0_49 = arith.constant 0 : index
    %c0_50 = arith.constant 0 : index
    %c0_51 = arith.constant 0 : index
    %179 = vector.load %arg12[%c0_49, %c0_50, %c0_51] : memref<2x1x32xf32, #tpu.memory_space<vmem>>, vector<1x1x32xf32>
    %180 = vector.shape_cast %179 : vector<1x1x32xf32> to vector<1x32xf32>
    %181 = vector.broadcast %180 : vector<1x32xf32> to vector<16x32xf32>
    %182 = arith.addf %178, %181 : vector<16x32xf32>
    %183 = arith.addf %164, %182 : vector<16x32xf32>
    %c0_52 = arith.constant 0 : index
    %c0_53 = arith.constant 0 : index
    %c0_54 = arith.constant 0 : index
    %184 = vector.load %arg13[%c0_52, %c0_53, %c0_54] : memref<2x1x32xf32, #tpu.memory_space<vmem>>, vector<1x1x32xf32>
    %185 = vector.shape_cast %184 : vector<1x1x32xf32> to vector<1x32xf32>
    %c0_55 = arith.constant 0 : index
    %c0_56 = arith.constant 0 : index
    %c0_57 = arith.constant 0 : index
    %186 = vector.load %arg14[%c0_55, %c0_56, %c0_57] : memref<2x1x32xf32, #tpu.memory_space<vmem>>, vector<1x1x32xf32>
    %187 = vector.shape_cast %186 : vector<1x1x32xf32> to vector<1x32xf32>
    %cst_58 = arith.constant dense<0.000000e+00> : vector<16xf32>
    %188 = vector.multi_reduction <add>, %183, %cst_58 [1] : vector<16x32xf32> to vector<16xf32>
    %189 = vector.shape_cast %188 : vector<16xf32> to vector<16x1xf32>
    %cst_59 = arith.constant 3.200000e+01 : f32
    %190 = vector.broadcast %cst_59 : f32 to vector<16x1xf32>
    %191 = arith.divf %189, %190 : vector<16x1xf32>
    %192 = vector.broadcast %191 : vector<16x1xf32> to vector<16x32xf32>
    %193 = arith.subf %183, %192 : vector<16x32xf32>
    %194 = arith.mulf %193, %193 : vector<16x32xf32>
    %cst_60 = arith.constant dense<0.000000e+00> : vector<16xf32>
    %195 = vector.multi_reduction <add>, %194, %cst_60 [1] : vector<16x32xf32> to vector<16xf32>
    %196 = vector.shape_cast %195 : vector<16xf32> to vector<16x1xf32>
    %cst_61 = arith.constant 3.200000e+01 : f32
    %197 = vector.broadcast %cst_61 : f32 to vector<16x1xf32>
    %198 = arith.divf %196, %197 : vector<16x1xf32>
    %cst_62 = arith.constant 9.99999974E-6 : f32
    %199 = vector.broadcast %cst_62 : f32 to vector<16x1xf32>
    %200 = arith.addf %198, %199 : vector<16x1xf32>
    %201 = math.rsqrt %200 : vector<16x1xf32>
    %202 = vector.broadcast %201 : vector<16x1xf32> to vector<16x32xf32>
    %203 = arith.mulf %193, %202 : vector<16x32xf32>
    %204 = vector.broadcast %185 : vector<1x32xf32> to vector<16x32xf32>
    %205 = arith.mulf %203, %204 : vector<16x32xf32>
    %206 = vector.broadcast %187 : vector<1x32xf32> to vector<16x32xf32>
    %207 = arith.addf %205, %206 : vector<16x32xf32>
    %208 = arith.truncf %207 : vector<16x32xf32> to vector<16x32xbf16>
    %c1 = arith.constant 1 : index
    %c0_63 = arith.constant 0 : index
    %c0_64 = arith.constant 0 : index
    %209 = vector.load %arg3[%c1, %c0_63, %c0_64] : memref<2x32x96xbf16, #tpu.memory_space<vmem>>, vector<1x32x96xbf16>
    %210 = vector.shape_cast %209 : vector<1x32x96xbf16> to vector<32x96xbf16>
    %cst_65 = arith.constant dense<0.000000e+00> : vector<16x96xf32>
    %211 = tpu.matmul %208, %210, %cst_65 {dimension_numbers = #tpu.dot_dimension_numbers<[1], [0], [0], [1], [0, 0, 1, 1], [], []>} : vector<16x32xbf16>, vector<32x96xbf16>, vector<16x96xf32> -> vector<16x96xf32>
    %c1_66 = arith.constant 1 : index
    %c0_67 = arith.constant 0 : index
    %c0_68 = arith.constant 0 : index
    %212 = vector.load %arg4[%c1_66, %c0_67, %c0_68] : memref<2x1x96xf32, #tpu.memory_space<vmem>>, vector<1x1x96xf32>
    %213 = vector.shape_cast %212 : vector<1x1x96xf32> to vector<1x96xf32>
    %214 = vector.broadcast %213 : vector<1x96xf32> to vector<16x96xf32>
    %215 = arith.addf %211, %214 : vector<16x96xf32>
    %216 = vector.extract_strided_slice %215 {offsets = [0, 0], sizes = [16, 32], strides = [1, 1]} : vector<16x96xf32> to vector<16x32xf32>
    %217 = arith.truncf %216 : vector<16x32xf32> to vector<16x32xbf16>
    %218 = vector.extract_strided_slice %215 {offsets = [0, 32], sizes = [16, 32], strides = [1, 1]} : vector<16x96xf32> to vector<16x32xf32>
    %219 = arith.truncf %218 : vector<16x32xf32> to vector<16x32xbf16>
    %220 = vector.extract_strided_slice %215 {offsets = [0, 64], sizes = [16, 32], strides = [1, 1]} : vector<16x96xf32> to vector<16x32xf32>
    %221 = arith.truncf %220 : vector<16x32xf32> to vector<16x32xbf16>
    %222 = vector.extract_strided_slice %217 {offsets = [0, 0], sizes = [8, 32], strides = [1, 1]} : vector<16x32xbf16> to vector<8x32xbf16>
    %223 = vector.extract_strided_slice %222 {offsets = [0, 0], sizes = [8, 8], strides = [1, 1]} : vector<8x32xbf16> to vector<8x8xbf16>
    %224 = vector.shape_cast %223 : vector<8x8xbf16> to vector<1x8x8xbf16>
    %225 = vector.extract_strided_slice %222 {offsets = [0, 8], sizes = [8, 8], strides = [1, 1]} : vector<8x32xbf16> to vector<8x8xbf16>
    %226 = vector.shape_cast %225 : vector<8x8xbf16> to vector<1x8x8xbf16>
    %227 = vector.extract_strided_slice %222 {offsets = [0, 16], sizes = [8, 8], strides = [1, 1]} : vector<8x32xbf16> to vector<8x8xbf16>
    %228 = vector.shape_cast %227 : vector<8x8xbf16> to vector<1x8x8xbf16>
    %229 = vector.extract_strided_slice %222 {offsets = [0, 24], sizes = [8, 8], strides = [1, 1]} : vector<8x32xbf16> to vector<8x8xbf16>
    %230 = vector.shape_cast %229 : vector<8x8xbf16> to vector<1x8x8xbf16>
    %231 = tpu.concatenate %224, %226, %228, %230 in 0 : vector<1x8x8xbf16>, vector<1x8x8xbf16>, vector<1x8x8xbf16>, vector<1x8x8xbf16> -> vector<4x8x8xbf16>
    %232 = vector.extract_strided_slice %219 {offsets = [0, 0], sizes = [8, 32], strides = [1, 1]} : vector<16x32xbf16> to vector<8x32xbf16>
    %233 = vector.extract_strided_slice %232 {offsets = [0, 0], sizes = [8, 8], strides = [1, 1]} : vector<8x32xbf16> to vector<8x8xbf16>
    %234 = vector.shape_cast %233 : vector<8x8xbf16> to vector<1x8x8xbf16>
    %235 = vector.extract_strided_slice %232 {offsets = [0, 8], sizes = [8, 8], strides = [1, 1]} : vector<8x32xbf16> to vector<8x8xbf16>
    %236 = vector.shape_cast %235 : vector<8x8xbf16> to vector<1x8x8xbf16>
    %237 = vector.extract_strided_slice %232 {offsets = [0, 16], sizes = [8, 8], strides = [1, 1]} : vector<8x32xbf16> to vector<8x8xbf16>
    %238 = vector.shape_cast %237 : vector<8x8xbf16> to vector<1x8x8xbf16>
    %239 = vector.extract_strided_slice %232 {offsets = [0, 24], sizes = [8, 8], strides = [1, 1]} : vector<8x32xbf16> to vector<8x8xbf16>
    %240 = vector.shape_cast %239 : vector<8x8xbf16> to vector<1x8x8xbf16>
    %241 = tpu.concatenate %234, %236, %238, %240 in 0 : vector<1x8x8xbf16>, vector<1x8x8xbf16>, vector<1x8x8xbf16>, vector<1x8x8xbf16> -> vector<4x8x8xbf16>
    %242 = vector.extract_strided_slice %221 {offsets = [0, 0], sizes = [8, 32], strides = [1, 1]} : vector<16x32xbf16> to vector<8x32xbf16>
    %243 = vector.extract_strided_slice %242 {offsets = [0, 0], sizes = [8, 8], strides = [1, 1]} : vector<8x32xbf16> to vector<8x8xbf16>
    %244 = vector.shape_cast %243 : vector<8x8xbf16> to vector<1x8x8xbf16>
    %245 = vector.extract_strided_slice %242 {offsets = [0, 8], sizes = [8, 8], strides = [1, 1]} : vector<8x32xbf16> to vector<8x8xbf16>
    %246 = vector.shape_cast %245 : vector<8x8xbf16> to vector<1x8x8xbf16>
    %247 = vector.extract_strided_slice %242 {offsets = [0, 16], sizes = [8, 8], strides = [1, 1]} : vector<8x32xbf16> to vector<8x8xbf16>
    %248 = vector.shape_cast %247 : vector<8x8xbf16> to vector<1x8x8xbf16>
    %249 = vector.extract_strided_slice %242 {offsets = [0, 24], sizes = [8, 8], strides = [1, 1]} : vector<8x32xbf16> to vector<8x8xbf16>
    %250 = vector.shape_cast %249 : vector<8x8xbf16> to vector<1x8x8xbf16>
    %251 = tpu.concatenate %244, %246, %248, %250 in 0 : vector<1x8x8xbf16>, vector<1x8x8xbf16>, vector<1x8x8xbf16>, vector<1x8x8xbf16> -> vector<4x8x8xbf16>
    "tpu.trace_start"() <{level = 10 : i32, message = "hqd,hkd->hqk"}> : () -> ()
    %cst_69 = arith.constant dense<0.000000e+00> : vector<4x8x8xf32>
    %252 = tpu.matmul %231, %241, %cst_69 {dimension_numbers = #tpu.dot_dimension_numbers<[2], [2], [1], [1], [0, 0, 0, 1, 1, 1], [0], [0]>} : vector<4x8x8xbf16>, vector<4x8x8xbf16>, vector<4x8x8xf32> -> vector<4x8x8xf32>
    "tpu.trace_stop"() : () -> ()
    %253 = vector.extract_strided_slice %2 {offsets = [0, 0, 0], sizes = [1, 1, 8], strides = [1, 1, 1]} : vector<2x1x8xf32> to vector<1x1x8xf32>
    %254 = vector.shape_cast %253 : vector<1x1x8xf32> to vector<1x8xf32>
    %255 = vector.shape_cast %254 : vector<1x8xf32> to vector<1x1x8xf32>
    %256 = vector.broadcast %255 : vector<1x1x8xf32> to vector<4x8x8xf32>
    %257 = arith.addf %252, %256 : vector<4x8x8xf32>
    %cst_70 = arith.constant dense<0xFF800000> : vector<4x8xf32>
    %258 = vector.multi_reduction <maximumf>, %257, %cst_70 [2] : vector<4x8x8xf32> to vector<4x8xf32>
    %259 = vector.shape_cast %258 : vector<4x8xf32> to vector<4x8x1xf32>
    %260 = vector.broadcast %259 : vector<4x8x1xf32> to vector<4x8x8xf32>
    %261 = arith.subf %257, %260 : vector<4x8x8xf32>
    %262 = math.exp %261 : vector<4x8x8xf32>
    %cst_71 = arith.constant dense<0.000000e+00> : vector<4x8xf32>
    %263 = vector.multi_reduction <add>, %262, %cst_71 [2] : vector<4x8x8xf32> to vector<4x8xf32>
    %264 = vector.shape_cast %263 : vector<4x8xf32> to vector<4x8x1xf32>
    %265 = tpu.reciprocal %264 {approx = true} : vector<4x8x1xf32> -> vector<4x8x1xf32>
    %266 = vector.broadcast %265 : vector<4x8x1xf32> to vector<4x8x8xf32>
    %267 = arith.mulf %262, %266 : vector<4x8x8xf32>
    %268 = arith.truncf %267 : vector<4x8x8xf32> to vector<4x8x8xbf16>
    "tpu.trace_start"() <{level = 10 : i32, message = "hqk,hkd->hqd"}> : () -> ()
    %cst_72 = arith.constant dense<0.000000e+00> : vector<4x8x8xf32>
    %269 = tpu.matmul %268, %251, %cst_72 {dimension_numbers = #tpu.dot_dimension_numbers<[2], [1], [1], [2], [0, 0, 0, 1, 1, 2], [0], [0]>} : vector<4x8x8xbf16>, vector<4x8x8xbf16>, vector<4x8x8xf32> -> vector<4x8x8xf32>
    "tpu.trace_stop"() : () -> ()
    %270 = vector.extract_strided_slice %269 {offsets = [0, 0, 0], sizes = [1, 8, 8], strides = [1, 1, 1]} : vector<4x8x8xf32> to vector<1x8x8xf32>
    %271 = vector.shape_cast %270 : vector<1x8x8xf32> to vector<8x8xf32>
    %272 = vector.extract_strided_slice %269 {offsets = [1, 0, 0], sizes = [1, 8, 8], strides = [1, 1, 1]} : vector<4x8x8xf32> to vector<1x8x8xf32>
    %273 = vector.shape_cast %272 : vector<1x8x8xf32> to vector<8x8xf32>
    %274 = vector.extract_strided_slice %269 {offsets = [2, 0, 0], sizes = [1, 8, 8], strides = [1, 1, 1]} : vector<4x8x8xf32> to vector<1x8x8xf32>
    %275 = vector.shape_cast %274 : vector<1x8x8xf32> to vector<8x8xf32>
    %276 = vector.extract_strided_slice %269 {offsets = [3, 0, 0], sizes = [1, 8, 8], strides = [1, 1, 1]} : vector<4x8x8xf32> to vector<1x8x8xf32>
    %277 = vector.shape_cast %276 : vector<1x8x8xf32> to vector<8x8xf32>
    %278 = tpu.concatenate %271, %273, %275, %277 in 1 : vector<8x8xf32>, vector<8x8xf32>, vector<8x8xf32>, vector<8x8xf32> -> vector<8x32xf32>
    %279 = vector.extract_strided_slice %217 {offsets = [8, 0], sizes = [8, 32], strides = [1, 1]} : vector<16x32xbf16> to vector<8x32xbf16>
    %280 = vector.extract_strided_slice %279 {offsets = [0, 0], sizes = [8, 8], strides = [1, 1]} : vector<8x32xbf16> to vector<8x8xbf16>
    %281 = vector.shape_cast %280 : vector<8x8xbf16> to vector<1x8x8xbf16>
    %282 = vector.extract_strided_slice %279 {offsets = [0, 8], sizes = [8, 8], strides = [1, 1]} : vector<8x32xbf16> to vector<8x8xbf16>
    %283 = vector.shape_cast %282 : vector<8x8xbf16> to vector<1x8x8xbf16>
    %284 = vector.extract_strided_slice %279 {offsets = [0, 16], sizes = [8, 8], strides = [1, 1]} : vector<8x32xbf16> to vector<8x8xbf16>
    %285 = vector.shape_cast %284 : vector<8x8xbf16> to vector<1x8x8xbf16>
    %286 = vector.extract_strided_slice %279 {offsets = [0, 24], sizes = [8, 8], strides = [1, 1]} : vector<8x32xbf16> to vector<8x8xbf16>
    %287 = vector.shape_cast %286 : vector<8x8xbf16> to vector<1x8x8xbf16>
    %288 = tpu.concatenate %281, %283, %285, %287 in 0 : vector<1x8x8xbf16>, vector<1x8x8xbf16>, vector<1x8x8xbf16>, vector<1x8x8xbf16> -> vector<4x8x8xbf16>
    %289 = vector.extract_strided_slice %219 {offsets = [8, 0], sizes = [8, 32], strides = [1, 1]} : vector<16x32xbf16> to vector<8x32xbf16>
    %290 = vector.extract_strided_slice %289 {offsets = [0, 0], sizes = [8, 8], strides = [1, 1]} : vector<8x32xbf16> to vector<8x8xbf16>
    %291 = vector.shape_cast %290 : vector<8x8xbf16> to vector<1x8x8xbf16>
    %292 = vector.extract_strided_slice %289 {offsets = [0, 8], sizes = [8, 8], strides = [1, 1]} : vector<8x32xbf16> to vector<8x8xbf16>
    %293 = vector.shape_cast %292 : vector<8x8xbf16> to vector<1x8x8xbf16>
    %294 = vector.extract_strided_slice %289 {offsets = [0, 16], sizes = [8, 8], strides = [1, 1]} : vector<8x32xbf16> to vector<8x8xbf16>
    %295 = vector.shape_cast %294 : vector<8x8xbf16> to vector<1x8x8xbf16>
    %296 = vector.extract_strided_slice %289 {offsets = [0, 24], sizes = [8, 8], strides = [1, 1]} : vector<8x32xbf16> to vector<8x8xbf16>
    %297 = vector.shape_cast %296 : vector<8x8xbf16> to vector<1x8x8xbf16>
    %298 = tpu.concatenate %291, %293, %295, %297 in 0 : vector<1x8x8xbf16>, vector<1x8x8xbf16>, vector<1x8x8xbf16>, vector<1x8x8xbf16> -> vector<4x8x8xbf16>
    %299 = vector.extract_strided_slice %221 {offsets = [8, 0], sizes = [8, 32], strides = [1, 1]} : vector<16x32xbf16> to vector<8x32xbf16>
    %300 = vector.extract_strided_slice %299 {offsets = [0, 0], sizes = [8, 8], strides = [1, 1]} : vector<8x32xbf16> to vector<8x8xbf16>
    %301 = vector.shape_cast %300 : vector<8x8xbf16> to vector<1x8x8xbf16>
    %302 = vector.extract_strided_slice %299 {offsets = [0, 8], sizes = [8, 8], strides = [1, 1]} : vector<8x32xbf16> to vector<8x8xbf16>
    %303 = vector.shape_cast %302 : vector<8x8xbf16> to vector<1x8x8xbf16>
    %304 = vector.extract_strided_slice %299 {offsets = [0, 16], sizes = [8, 8], strides = [1, 1]} : vector<8x32xbf16> to vector<8x8xbf16>
    %305 = vector.shape_cast %304 : vector<8x8xbf16> to vector<1x8x8xbf16>
    %306 = vector.extract_strided_slice %299 {offsets = [0, 24], sizes = [8, 8], strides = [1, 1]} : vector<8x32xbf16> to vector<8x8xbf16>
    %307 = vector.shape_cast %306 : vector<8x8xbf16> to vector<1x8x8xbf16>
    %308 = tpu.concatenate %301, %303, %305, %307 in 0 : vector<1x8x8xbf16>, vector<1x8x8xbf16>, vector<1x8x8xbf16>, vector<1x8x8xbf16> -> vector<4x8x8xbf16>
    "tpu.trace_start"() <{level = 10 : i32, message = "hqd,hkd->hqk"}> : () -> ()
    %cst_73 = arith.constant dense<0.000000e+00> : vector<4x8x8xf32>
    %309 = tpu.matmul %288, %298, %cst_73 {dimension_numbers = #tpu.dot_dimension_numbers<[2], [2], [1], [1], [0, 0, 0, 1, 1, 1], [0], [0]>} : vector<4x8x8xbf16>, vector<4x8x8xbf16>, vector<4x8x8xf32> -> vector<4x8x8xf32>
    "tpu.trace_stop"() : () -> ()
    %310 = vector.extract_strided_slice %2 {offsets = [1, 0, 0], sizes = [1, 1, 8], strides = [1, 1, 1]} : vector<2x1x8xf32> to vector<1x1x8xf32>
    %311 = vector.shape_cast %310 : vector<1x1x8xf32> to vector<1x8xf32>
    %312 = vector.shape_cast %311 : vector<1x8xf32> to vector<1x1x8xf32>
    %313 = vector.broadcast %312 : vector<1x1x8xf32> to vector<4x8x8xf32>
    %314 = arith.addf %309, %313 : vector<4x8x8xf32>
    %cst_74 = arith.constant dense<0xFF800000> : vector<4x8xf32>
    %315 = vector.multi_reduction <maximumf>, %314, %cst_74 [2] : vector<4x8x8xf32> to vector<4x8xf32>
    %316 = vector.shape_cast %315 : vector<4x8xf32> to vector<4x8x1xf32>
    %317 = vector.broadcast %316 : vector<4x8x1xf32> to vector<4x8x8xf32>
    %318 = arith.subf %314, %317 : vector<4x8x8xf32>
    %319 = math.exp %318 : vector<4x8x8xf32>
    %cst_75 = arith.constant dense<0.000000e+00> : vector<4x8xf32>
    %320 = vector.multi_reduction <add>, %319, %cst_75 [2] : vector<4x8x8xf32> to vector<4x8xf32>
    %321 = vector.shape_cast %320 : vector<4x8xf32> to vector<4x8x1xf32>
    %322 = tpu.reciprocal %321 {approx = true} : vector<4x8x1xf32> -> vector<4x8x1xf32>
    %323 = vector.broadcast %322 : vector<4x8x1xf32> to vector<4x8x8xf32>
    %324 = arith.mulf %319, %323 : vector<4x8x8xf32>
    %325 = arith.truncf %324 : vector<4x8x8xf32> to vector<4x8x8xbf16>
    "tpu.trace_start"() <{level = 10 : i32, message = "hqk,hkd->hqd"}> : () -> ()
    %cst_76 = arith.constant dense<0.000000e+00> : vector<4x8x8xf32>
    %326 = tpu.matmul %325, %308, %cst_76 {dimension_numbers = #tpu.dot_dimension_numbers<[2], [1], [1], [2], [0, 0, 0, 1, 1, 2], [0], [0]>} : vector<4x8x8xbf16>, vector<4x8x8xbf16>, vector<4x8x8xf32> -> vector<4x8x8xf32>
    "tpu.trace_stop"() : () -> ()
    %327 = vector.extract_strided_slice %326 {offsets = [0, 0, 0], sizes = [1, 8, 8], strides = [1, 1, 1]} : vector<4x8x8xf32> to vector<1x8x8xf32>
    %328 = vector.shape_cast %327 : vector<1x8x8xf32> to vector<8x8xf32>
    %329 = vector.extract_strided_slice %326 {offsets = [1, 0, 0], sizes = [1, 8, 8], strides = [1, 1, 1]} : vector<4x8x8xf32> to vector<1x8x8xf32>
    %330 = vector.shape_cast %329 : vector<1x8x8xf32> to vector<8x8xf32>
    %331 = vector.extract_strided_slice %326 {offsets = [2, 0, 0], sizes = [1, 8, 8], strides = [1, 1, 1]} : vector<4x8x8xf32> to vector<1x8x8xf32>
    %332 = vector.shape_cast %331 : vector<1x8x8xf32> to vector<8x8xf32>
    %333 = vector.extract_strided_slice %326 {offsets = [3, 0, 0], sizes = [1, 8, 8], strides = [1, 1, 1]} : vector<4x8x8xf32> to vector<1x8x8xf32>
    %334 = vector.shape_cast %333 : vector<1x8x8xf32> to vector<8x8xf32>
    %335 = tpu.concatenate %328, %330, %332, %334 in 1 : vector<8x8xf32>, vector<8x8xf32>, vector<8x8xf32>, vector<8x8xf32> -> vector<8x32xf32>
    %336 = tpu.concatenate %278, %335 in 0 : vector<8x32xf32>, vector<8x32xf32> -> vector<16x32xf32>
    %337 = arith.truncf %336 : vector<16x32xf32> to vector<16x32xbf16>
    %c1_77 = arith.constant 1 : index
    %c0_78 = arith.constant 0 : index
    %c0_79 = arith.constant 0 : index
    %338 = vector.load %arg5[%c1_77, %c0_78, %c0_79] : memref<2x32x32xbf16, #tpu.memory_space<vmem>>, vector<1x32x32xbf16>
    %339 = vector.shape_cast %338 : vector<1x32x32xbf16> to vector<32x32xbf16>
    %cst_80 = arith.constant dense<0.000000e+00> : vector<16x32xf32>
    %340 = tpu.matmul %337, %339, %cst_80 {dimension_numbers = #tpu.dot_dimension_numbers<[1], [0], [0], [1], [0, 0, 1, 1], [], []>} : vector<16x32xbf16>, vector<32x32xbf16>, vector<16x32xf32> -> vector<16x32xf32>
    %c1_81 = arith.constant 1 : index
    %c0_82 = arith.constant 0 : index
    %c0_83 = arith.constant 0 : index
    %341 = vector.load %arg6[%c1_81, %c0_82, %c0_83] : memref<2x1x32xf32, #tpu.memory_space<vmem>>, vector<1x1x32xf32>
    %342 = vector.shape_cast %341 : vector<1x1x32xf32> to vector<1x32xf32>
    %343 = vector.broadcast %342 : vector<1x32xf32> to vector<16x32xf32>
    %344 = arith.addf %340, %343 : vector<16x32xf32>
    %345 = arith.addf %207, %344 : vector<16x32xf32>
    %c1_84 = arith.constant 1 : index
    %c0_85 = arith.constant 0 : index
    %c0_86 = arith.constant 0 : index
    %346 = vector.load %arg7[%c1_84, %c0_85, %c0_86] : memref<2x1x32xf32, #tpu.memory_space<vmem>>, vector<1x1x32xf32>
    %347 = vector.shape_cast %346 : vector<1x1x32xf32> to vector<1x32xf32>
    %c1_87 = arith.constant 1 : index
    %c0_88 = arith.constant 0 : index
    %c0_89 = arith.constant 0 : index
    %348 = vector.load %arg8[%c1_87, %c0_88, %c0_89] : memref<2x1x32xf32, #tpu.memory_space<vmem>>, vector<1x1x32xf32>
    %349 = vector.shape_cast %348 : vector<1x1x32xf32> to vector<1x32xf32>
    %cst_90 = arith.constant dense<0.000000e+00> : vector<16xf32>
    %350 = vector.multi_reduction <add>, %345, %cst_90 [1] : vector<16x32xf32> to vector<16xf32>
    %351 = vector.shape_cast %350 : vector<16xf32> to vector<16x1xf32>
    %cst_91 = arith.constant 3.200000e+01 : f32
    %352 = vector.broadcast %cst_91 : f32 to vector<16x1xf32>
    %353 = arith.divf %351, %352 : vector<16x1xf32>
    %354 = vector.broadcast %353 : vector<16x1xf32> to vector<16x32xf32>
    %355 = arith.subf %345, %354 : vector<16x32xf32>
    %356 = arith.mulf %355, %355 : vector<16x32xf32>
    %cst_92 = arith.constant dense<0.000000e+00> : vector<16xf32>
    %357 = vector.multi_reduction <add>, %356, %cst_92 [1] : vector<16x32xf32> to vector<16xf32>
    %358 = vector.shape_cast %357 : vector<16xf32> to vector<16x1xf32>
    %cst_93 = arith.constant 3.200000e+01 : f32
    %359 = vector.broadcast %cst_93 : f32 to vector<16x1xf32>
    %360 = arith.divf %358, %359 : vector<16x1xf32>
    %cst_94 = arith.constant 9.99999974E-6 : f32
    %361 = vector.broadcast %cst_94 : f32 to vector<16x1xf32>
    %362 = arith.addf %360, %361 : vector<16x1xf32>
    %363 = math.rsqrt %362 : vector<16x1xf32>
    %364 = vector.broadcast %363 : vector<16x1xf32> to vector<16x32xf32>
    %365 = arith.mulf %355, %364 : vector<16x32xf32>
    %366 = vector.broadcast %347 : vector<1x32xf32> to vector<16x32xf32>
    %367 = arith.mulf %365, %366 : vector<16x32xf32>
    %368 = vector.broadcast %349 : vector<1x32xf32> to vector<16x32xf32>
    %369 = arith.addf %367, %368 : vector<16x32xf32>
    %370 = arith.truncf %369 : vector<16x32xf32> to vector<16x32xbf16>
    %c1_95 = arith.constant 1 : index
    %c0_96 = arith.constant 0 : index
    %c0_97 = arith.constant 0 : index
    %371 = vector.load %arg9[%c1_95, %c0_96, %c0_97] : memref<2x32x64xbf16, #tpu.memory_space<vmem>>, vector<1x32x64xbf16>
    %372 = vector.shape_cast %371 : vector<1x32x64xbf16> to vector<32x64xbf16>
    %cst_98 = arith.constant dense<0.000000e+00> : vector<16x64xf32>
    %373 = tpu.matmul %370, %372, %cst_98 {dimension_numbers = #tpu.dot_dimension_numbers<[1], [0], [0], [1], [0, 0, 1, 1], [], []>} : vector<16x32xbf16>, vector<32x64xbf16>, vector<16x64xf32> -> vector<16x64xf32>
    %c1_99 = arith.constant 1 : index
    %c0_100 = arith.constant 0 : index
    %c0_101 = arith.constant 0 : index
    %374 = vector.load %arg10[%c1_99, %c0_100, %c0_101] : memref<2x1x64xf32, #tpu.memory_space<vmem>>, vector<1x1x64xf32>
    %375 = vector.shape_cast %374 : vector<1x1x64xf32> to vector<1x64xf32>
    %376 = vector.broadcast %375 : vector<1x64xf32> to vector<16x64xf32>
    %377 = arith.addf %373, %376 : vector<16x64xf32>
    %cst_102 = arith.constant 0.000000e+00 : f32
    %378 = vector.broadcast %cst_102 : f32 to vector<16x64xf32>
    %379 = arith.maximumf %377, %378 : vector<16x64xf32>
    %380 = arith.truncf %379 : vector<16x64xf32> to vector<16x64xbf16>
    %c1_103 = arith.constant 1 : index
    %c0_104 = arith.constant 0 : index
    %c0_105 = arith.constant 0 : index
    %381 = vector.load %arg11[%c1_103, %c0_104, %c0_105] : memref<2x64x32xbf16, #tpu.memory_space<vmem>>, vector<1x64x32xbf16>
    %382 = vector.shape_cast %381 : vector<1x64x32xbf16> to vector<64x32xbf16>
    %cst_106 = arith.constant dense<0.000000e+00> : vector<16x32xf32>
    %383 = tpu.matmul %380, %382, %cst_106 {dimension_numbers = #tpu.dot_dimension_numbers<[1], [0], [0], [1], [0, 0, 1, 1], [], []>} : vector<16x64xbf16>, vector<64x32xbf16>, vector<16x32xf32> -> vector<16x32xf32>
    %c1_107 = arith.constant 1 : index
    %c0_108 = arith.constant 0 : index
    %c0_109 = arith.constant 0 : index
    %384 = vector.load %arg12[%c1_107, %c0_108, %c0_109] : memref<2x1x32xf32, #tpu.memory_space<vmem>>, vector<1x1x32xf32>
    %385 = vector.shape_cast %384 : vector<1x1x32xf32> to vector<1x32xf32>
    %386 = vector.broadcast %385 : vector<1x32xf32> to vector<16x32xf32>
    %387 = arith.addf %383, %386 : vector<16x32xf32>
    %388 = arith.addf %369, %387 : vector<16x32xf32>
    %c1_110 = arith.constant 1 : index
    %c0_111 = arith.constant 0 : index
    %c0_112 = arith.constant 0 : index
    %389 = vector.load %arg13[%c1_110, %c0_111, %c0_112] : memref<2x1x32xf32, #tpu.memory_space<vmem>>, vector<1x1x32xf32>
    %390 = vector.shape_cast %389 : vector<1x1x32xf32> to vector<1x32xf32>
    %c1_113 = arith.constant 1 : index
    %c0_114 = arith.constant 0 : index
    %c0_115 = arith.constant 0 : index
    %391 = vector.load %arg14[%c1_113, %c0_114, %c0_115] : memref<2x1x32xf32, #tpu.memory_space<vmem>>, vector<1x1x32xf32>
    %392 = vector.shape_cast %391 : vector<1x1x32xf32> to vector<1x32xf32>
    %cst_116 = arith.constant dense<0.000000e+00> : vector<16xf32>
    %393 = vector.multi_reduction <add>, %388, %cst_116 [1] : vector<16x32xf32> to vector<16xf32>
    %394 = vector.shape_cast %393 : vector<16xf32> to vector<16x1xf32>
    %cst_117 = arith.constant 3.200000e+01 : f32
    %395 = vector.broadcast %cst_117 : f32 to vector<16x1xf32>
    %396 = arith.divf %394, %395 : vector<16x1xf32>
    %397 = vector.broadcast %396 : vector<16x1xf32> to vector<16x32xf32>
    %398 = arith.subf %388, %397 : vector<16x32xf32>
    %399 = arith.mulf %398, %398 : vector<16x32xf32>
    %cst_118 = arith.constant dense<0.000000e+00> : vector<16xf32>
    %400 = vector.multi_reduction <add>, %399, %cst_118 [1] : vector<16x32xf32> to vector<16xf32>
    %401 = vector.shape_cast %400 : vector<16xf32> to vector<16x1xf32>
    %cst_119 = arith.constant 3.200000e+01 : f32
    %402 = vector.broadcast %cst_119 : f32 to vector<16x1xf32>
    %403 = arith.divf %401, %402 : vector<16x1xf32>
    %cst_120 = arith.constant 9.99999974E-6 : f32
    %404 = vector.broadcast %cst_120 : f32 to vector<16x1xf32>
    %405 = arith.addf %403, %404 : vector<16x1xf32>
    %406 = math.rsqrt %405 : vector<16x1xf32>
    %407 = vector.broadcast %406 : vector<16x1xf32> to vector<16x32xf32>
    %408 = arith.mulf %398, %407 : vector<16x32xf32>
    %409 = vector.broadcast %390 : vector<1x32xf32> to vector<16x32xf32>
    %410 = arith.mulf %408, %409 : vector<16x32xf32>
    %411 = vector.broadcast %392 : vector<1x32xf32> to vector<16x32xf32>
    %412 = arith.addf %410, %411 : vector<16x32xf32>
    %413 = vector.shape_cast %412 : vector<16x32xf32> to vector<2x8x32xf32>
    %c0_121 = arith.constant 0 : index
    %c0_122 = arith.constant 0 : index
    %c0_123 = arith.constant 0 : index
    %414 = vector.load %arg15[%c0_121, %c0_122, %c0_123] : memref<2x8x32xf32, #tpu.memory_space<vmem>>, vector<2x8x32xf32>
    tpu.vector_store %arg15[%c0_121, %c0_122, %c0_123], %413 {strides = array<i32>} : memref<2x8x32xf32, #tpu.memory_space<vmem>>, vector<2x8x32xf32>,
    return
  }
  func.func @transform_0(%arg0: i32) -> (i32, i32, i32) {
    %c0_i32 = arith.constant 0 : i32
    %c0_i32_0 = arith.constant 0 : i32
    %c0_i32_1 = arith.constant 0 : i32
    %c0_i32_2 = arith.constant 0 : i32
    return %c0_i32, %c0_i32_0, %c0_i32_1 : i32, i32, i32
  }
  func.func @transform_1(%arg0: i32) -> (i32, i32, i32) {
    %c0_i32 = arith.constant 0 : i32
    %c0_i32_0 = arith.constant 0 : i32
    %c0_i32_1 = arith.constant 0 : i32
    %c0_i32_2 = arith.constant 0 : i32
    return %c0_i32, %c0_i32_0, %c0_i32_1 : i32, i32, i32
  }
  func.func @transform_2(%arg0: i32) -> (i32, i32, i32) {
    %c0_i32 = arith.constant 0 : i32
    %c0_i32_0 = arith.constant 0 : i32
    %c0_i32_1 = arith.constant 0 : i32
    %c0_i32_2 = arith.constant 0 : i32
    return %c0_i32, %c0_i32_0, %c0_i32_1 : i32, i32, i32
  }
  func.func @transform_3(%arg0: i32) -> (i32, i32, i32) {
    %c0_i32 = arith.constant 0 : i32
    %c0_i32_0 = arith.constant 0 : i32
    %c0_i32_1 = arith.constant 0 : i32
    %c0_i32_2 = arith.constant 0 : i32
    return %c0_i32, %c0_i32_0, %c0_i32_1 : i32, i32, i32
  }
  func.func @transform_4(%arg0: i32) -> (i32, i32, i32) {
    %c0_i32 = arith.constant 0 : i32
    %c0_i32_0 = arith.constant 0 : i32
    %c0_i32_1 = arith.constant 0 : i32
    %c0_i32_2 = arith.constant 0 : i32
    return %c0_i32, %c0_i32_0, %c0_i32_1 : i32, i32, i32
  }
  func.func @transform_5(%arg0: i32) -> (i32, i32, i32) {
    %c0_i32 = arith.constant 0 : i32
    %c0_i32_0 = arith.constant 0 : i32
    %c0_i32_1 = arith.constant 0 : i32
    %c0_i32_2 = arith.constant 0 : i32
    return %c0_i32, %c0_i32_0, %c0_i32_1 : i32, i32, i32
  }
  func.func @transform_6(%arg0: i32) -> (i32, i32, i32) {
    %c0_i32 = arith.constant 0 : i32
    %c0_i32_0 = arith.constant 0 : i32
    %c0_i32_1 = arith.constant 0 : i32
    %c0_i32_2 = arith.constant 0 : i32
    return %c0_i32, %c0_i32_0, %c0_i32_1 : i32, i32, i32
  }
  func.func @transform_7(%arg0: i32) -> (i32, i32, i32) {
    %c0_i32 = arith.constant 0 : i32
    %c0_i32_0 = arith.constant 0 : i32
    %c0_i32_1 = arith.constant 0 : i32
    %c0_i32_2 = arith.constant 0 : i32
    return %c0_i32, %c0_i32_0, %c0_i32_1 : i32, i32, i32
  }
  func.func @transform_8(%arg0: i32) -> (i32, i32, i32) {
    %c0_i32 = arith.constant 0 : i32
    %c0_i32_0 = arith.constant 0 : i32
    %c0_i32_1 = arith.constant 0 : i32
    %c0_i32_2 = arith.constant 0 : i32
    return %c0_i32, %c0_i32_0, %c0_i32_1 : i32, i32, i32
  }
  func.func @transform_9(%arg0: i32) -> (i32, i32, i32) {
    %c0_i32 = arith.constant 0 : i32
    %c0_i32_0 = arith.constant 0 : i32
    %c0_i32_1 = arith.constant 0 : i32
    %c0_i32_2 = arith.constant 0 : i32
    return %c0_i32, %c0_i32_0, %c0_i32_1 : i32, i32, i32
  }
  func.func @transform_10(%arg0: i32) -> (i32, i32, i32) {
    %c0_i32 = arith.constant 0 : i32
    %c0_i32_0 = arith.constant 0 : i32
    %c0_i32_1 = arith.constant 0 : i32
    %c0_i32_2 = arith.constant 0 : i32
    return %c0_i32, %c0_i32_0, %c0_i32_1 : i32, i32, i32
  }
  func.func @transform_11(%arg0: i32) -> (i32, i32, i32) {
    %c0_i32 = arith.constant 0 : i32
    %c0_i32_0 = arith.constant 0 : i32
    %c0_i32_1 = arith.constant 0 : i32
    %c0_i32_2 = arith.constant 0 : i32
    return %c0_i32, %c0_i32_0, %c0_i32_1 : i32, i32, i32
  }
  func.func @transform_12(%arg0: i32) -> (i32, i32, i32) {
    %c0_i32 = arith.constant 0 : i32
    %c0_i32_0 = arith.constant 0 : i32
    %c0_i32_1 = arith.constant 0 : i32
    %c0_i32_2 = arith.constant 0 : i32
    return %c0_i32, %c0_i32_0, %c0_i32_1 : i32, i32, i32
  }
  func.func @transform_13(%arg0: i32) -> (i32, i32, i32) {
    %c0_i32 = arith.constant 0 : i32
    %c0_i32_0 = arith.constant 0 : i32
    %c0_i32_1 = arith.constant 0 : i32
    %c0_i32_2 = arith.constant 0 : i32
    return %c0_i32, %c0_i32_0, %c0_i32_1 : i32, i32, i32
  }
  func.func @transform_14(%arg0: i32) -> (i32, i32, i32) {
    %c0_i32 = arith.constant 0 : i32
    %c0_i32_0 = arith.constant 0 : i32
    %c0_i32_1 = arith.constant 0 : i32
    %c0_i32_2 = arith.constant 0 : i32
    return %c0_i32, %c0_i32_0, %c0_i32_1 : i32, i32, i32
  }
}

</mosaic_0001>

<bundles_post_ra>
// kernel: tpu_custom_call.1
= control target key start
LH: loop header
LB: loop body
LE: loop exit
PB: predicated region body
PF: predicated region fallthrough
CT: control target
= control target key end

     0   :  { %19 = vsyncpa [#allocation3], 0  ;;  %s4232_s0 = inlined_call_operand.hbm [shape: f32[2,8,32], index: 0, kind: input, shape index: {}]   ;;  %s4233_s1 = inlined_call_operand.vmem [shape: f32[2,1,8], index: 1, kind: input, shape index: {}]   ;;  %s4234_s2 = inlined_call_operand.vmem [shape: bf16[2,32,96], index: 2, kind: input, shape index: {}]   ;;  %s4235_s3 = inlined_call_operand.vmem [shape: f32[2,1,96], index: 3, kind: input, shape index: {}]   ;;  %s4236_s4 = inlined_call_operand.vmem [shape: bf16[2,32,32], index: 4, kind: input, shape index: {}]   ;;  %s4237_s5 = inlined_call_operand.hbm [shape: f32[2,1,32], index: 5, kind: input, shape index: {}]   ;;  %s4238_s6 = inlined_call_operand.hbm [shape: f32[2,1,32], index: 6, kind: input, shape index: {}]   ;;  %s4239_s7 = inlined_call_operand.hbm [shape: f32[2,1,32], index: 7, kind: input, shape index: {}]   ;;  %s4240_s8 = inlined_call_operand.vmem [shape: bf16[2,32,64], index: 8, kind: input, shape index: {}]   ;;  %s4241_s9 = inlined_call_operand.hbm [shape: f32[2,1,64], index: 9, kind: input, shape index: {}]   ;;  %s4242_s10 = inlined_call_operand.vmem [shape: bf16[2,64,32], index: 10, kind: input, shape index: {}]   ;;  %s4243_s11 = inlined_call_operand.vmem [shape: f32[2,1,32], index: 11, kind: input, shape index: {}]   ;;  %s4244_s12 = inlined_call_operand.vmem [shape: f32[2,1,32], index: 12, kind: input, shape index: {}]   ;;  %s4245_s13 = inlined_call_operand.vmem [shape: f32[2,1,32], index: 13, kind: input, shape index: {}]   ;;  %s4246_s14 = inlined_call_operand.hbm [shape: f32[2,8,32], index: 14, kind: output, shape index: {}]  }
   0x1   :  { %20 = vsyncpa [#allocation6], 0 }
   0x2   :  { %21 = vsyncpa [#allocation9], 0 }
   0x3   :  { %22 = vsyncpa [#allocation4], 0  ;;  %s3495_s29 = smov [#allocation5]   ;;  %s3355_s17 = scalar_lea.hbm %s4237_s5, 32 }
   0x4   :  { %s48_s30 = sshll.u32 %s3495_s29, 4  ;;  %p3356_p0 = scmp.ne.s32.totalorder %s4237_s5, %s3355_s17  ;;  %s49_s30 = int_to_ptr.vmem [resolvable:$true] %s48_s30 }
   0x5   :  { %p3359_p1 = scmp.lt.u32.totalorder %s3355_s17, %s4237_s5 }
   0x7   :  { %p3361_p2 = pnand %p3359_p1, %p3356_p0 }
   0x9   :  { %3364 = shalt.err (!%p3361_p2)
}
   0xa   :  { %s3365_s22 = scalar_lea.vmem %s49_s30, 32  ;;  %p3370_p4 = scmp.lt.s32.totalorder %s49_s30, %s49_s30 }
   0xb   :  { %p3366_p3 = scmp.ne.s32.totalorder %s49_s30, %s3365_s22  ;;  %p3371_p5 = scmp.lt.s32.totalorder %s3365_s22, %s3365_s22 }
   0xd   :  { %p3372_p6 = por %p3371_p5, %p3370_p4 }
   0xf   :  { %p3373_p7 = pnand %p3372_p6, %p3366_p3 }
  0x11   :  { %3376 = shalt.err (!%p3373_p7)
}
  0x12   :  { %s3496_s23 = smov 16   ;;  %s3497_s24 = smov 1  }
  0x13   :  { %54 = dma.hbm_to_vmem [thread:$0]  %s4237_s5, 32, %s49_s30, [#allocation6], %s3496_s23, %s3496_s23, %s3497_s24  }
  0x14   :  { %s3498_s27 = smov [#allocation8]   ;;  %s3499_s29 = smov [#allocation2]  }
  0x15   :  { %s72_s28 = sshll.u32 %s3498_s27, 4  ;;  %s28_s15 = sshll.u32 %s3499_s29, 4  ;;  %s73_s28 = int_to_ptr.vmem [resolvable:$true] %s72_s28  ;;  %s29_s15 = int_to_ptr.vmem [resolvable:$true] %s28_s15 }
  0x16   :  { %s3377_s18 = scalar_lea.hbm %s4239_s7, 32 }
  0x17   :  { %p3378_p8 = scmp.ne.s32.totalorder %s4239_s7, %s3377_s18  ;;  %p3381_p9 = scmp.lt.u32.totalorder %s3377_s18, %s4239_s7 }
  0x19   :  { %p3383_p10 = pnand %p3381_p9, %p3378_p8 }
  0x1b   :  { %3386 = shalt.err (!%p3383_p10)
}
  0x1c   :  { %s3387_s5 = scalar_lea.vmem %s73_s28, 32  ;;  %p3392_p12 = scmp.lt.s32.totalorder %s73_s28, %s73_s28 }
  0x1d   :  { %p3388_p11 = scmp.ne.s32.totalorder %s73_s28, %s3387_s5  ;;  %p3393_p13 = scmp.lt.s32.totalorder %s3387_s5, %s3387_s5 }
  0x1f   :  { %p3394_p0 = por %p3393_p13, %p3392_p12 }
  0x21   :  { %p3395_p1 = pnand %p3394_p0, %p3388_p11 }
  0x23   :  { %3398 = shalt.err (!%p3395_p1)
}
  0x24   :  { %78 = dma.hbm_to_vmem [thread:$0]  %s4239_s7, 32, %s73_s28, [#allocation9], %s3496_s23, %s3496_s23, %s3497_s24  }
  0x25   :  { %s3399_s29 = scalar_lea.hbm %s4232_s0, 256 }
  0x26   :  { %p3400_p2 = scmp.ne.s32.totalorder %s4232_s0, %s3399_s29  ;;  %p3403_p3 = scmp.lt.u32.totalorder %s3399_s29, %s4232_s0 }
  0x28   :  { %p3405_p4 = pnand %p3403_p3, %p3400_p2 }
  0x2a   :  { %3408 = shalt.err (!%p3405_p4)
}
  0x2b   :  { %s3409_s20 = scalar_lea.vmem %s29_s15, 256  ;;  %p3414_p6 = scmp.lt.s32.totalorder %s29_s15, %s29_s15 }
  0x2c   :  { %p3410_p5 = scmp.ne.s32.totalorder %s29_s15, %s3409_s20  ;;  %p3415_p7 = scmp.lt.s32.totalorder %s3409_s20, %s3409_s20 }
  0x2e   :  { %p3416_p8 = por %p3415_p7, %p3414_p6 }
  0x30   :  { %p3417_p9 = pnand %p3416_p8, %p3410_p5 }
  0x32   :  { %3420 = shalt.err (!%p3417_p9)
}
  0x33   :  { %s3500_s7 = smov 128   ;;  %s3501_s28 = smov 8  }
  0x34   :  { %34 = dma.hbm_to_vmem [thread:$0]  %s4232_s0, 256, %s29_s15, [#allocation3], %s3500_s7, %s3500_s7, %s3501_s28  }
  0x35   :  { %s3502_s5 = smov [#allocation7]   ;;  %s3503_s25 = smov [#allocation10]  }
  0x36   :  { %s60_s30 = sshll.u32 %s3502_s5, 4  ;;  %s86_s26 = sshll.u32 %s3503_s25, 4  ;;  %s61_s30 = int_to_ptr.vmem [resolvable:$true] %s60_s30  ;;  %s87_s26 = int_to_ptr.vmem [resolvable:$true] %s86_s26 }
  0x37   :  { %s3421_s16 = scalar_lea.hbm %s4238_s6, 32 }
  0x38   :  { %p3422_p10 = scmp.ne.s32.totalorder %s4238_s6, %s3421_s16  ;;  %p3425_p11 = scmp.lt.u32.totalorder %s3421_s16, %s4238_s6 }
  0x3a   :  { %p3427_p12 = pnand %p3425_p11, %p3422_p10 }
  0x3c   :  { %3430 = shalt.err (!%p3427_p12)
}
  0x3d   :  { %s3431_s0 = scalar_lea.vmem %s61_s30, 32  ;;  %p3436_p0 = scmp.lt.s32.totalorder %s61_s30, %s61_s30 }
  0x3e   :  { %p3432_p13 = scmp.ne.s32.totalorder %s61_s30, %s3431_s0  ;;  %p3437_p1 = scmp.lt.s32.totalorder %s3431_s0, %s3431_s0 }
  0x40   :  { %p3438_p2 = por %p3437_p1, %p3436_p0 }
  0x42   :  { %p3439_p3 = pnand %p3438_p2, %p3432_p13 }
  0x44   :  { %3442 = shalt.err (!%p3439_p3)
}
  0x45   :  { %66 = dma.hbm_to_vmem [thread:$0]  %s4238_s6, 32, %s61_s30, [#allocation6], %s3496_s23, %s3496_s23, %s3497_s24  }
  0x46   :  { %s3443_s25 = scalar_lea.hbm %s4241_s9, 32 }
  0x47   :  { %p3444_p4 = scmp.ne.s32.totalorder %s4241_s9, %s3443_s25  ;;  %p3447_p5 = scmp.lt.u32.totalorder %s3443_s25, %s4241_s9 }
  0x49   :  { %p3449_p6 = pnand %p3447_p5, %p3444_p4 }
  0x4b   :  { %3452 = shalt.err (!%p3449_p6)
}
  0x4c   :  { %s3453_s18 = scalar_lea.vmem %s87_s26, 32  ;;  %p3458_p8 = scmp.lt.s32.totalorder %s87_s26, %s87_s26 }
  0x4d   :  { %p3454_p7 = scmp.ne.s32.totalorder %s87_s26, %s3453_s18  ;;  %p3459_p9 = scmp.lt.s32.totalorder %s3453_s18, %s3453_s18 }
  0x4f   :  { %p3460_p10 = por %p3459_p9, %p3458_p8 }
  0x51   :  { %p3461_p11 = pnand %p3460_p10, %p3454_p7 }
  0x53   :  { %3464 = shalt.err (!%p3461_p11)
}
  0x54   :  { %92 = dma.hbm_to_vmem [thread:$0]  %s4241_s9, 32, %s87_s26, [#allocation9], %s3496_s23, %s3496_s23, %s3497_s24  }
  0x55   :  { %3487 = dma.done.wait [#allocation3], 256  }
  0x56   :  { %3488 = vsyncadd [#allocation3], 4294967040 }
  0x57   :  { %3489 = dma.done.wait [#allocation6], 64  }
  0x58   :  { %3490 = vsyncadd [#allocation6], 4294967232 }
  0x59   :  { %3491 = dma.done.wait [#allocation9], 64  }
  0x5a   :  { %3492 = vsyncadd [#allocation9], 4294967232  ;;  %v3504_v0 = vmov 0.0   ;;  %vm3505_vm0 = vmmov 0   ;;  %v3255_v1 = vld [vmem:[%s4234_s2] sm:$0xff]   ;;  %v3256_v2 = vld [vmem:[%s4234_s2 + $0x8] sm:$0xff]  }
  0x5b   :  { %2943 = vmatprep.subr.bf16.mxu1 %v3504_v0  ;;  %2947 = vmatprep.mubr.msk.bf16.mxu1 %vm3505_vm0, %v3504_v0  ;;  %v3675_v3 = vld [vmem:[#allocation2] sm:$0xff]  ;;  %v3677_v4 = vld [vmem:[#allocation2 + $0x8] sm:$0xff]  ;;  %vm145_vm1 = vcmask 261120   ;;  %s3506_s15 = smov 104   ;;  %s3507_s21 = smov 120   ;;  %vm206_vm2 = vcmask 64512  }
  0x5c   :  { %2957 = vmatprep.subr.bf16.mxu0 %v3504_v0  ;;  %2959 = vmatprep.mubr.msk.bf16.mxu0 %vm3505_vm0, %v3504_v0  ;;  %v121_v5 = vpack.c.bf16 %v3677_v4, %v3675_v3  ;;  %v2749_v6 = vld [vmem:[%s4235_s3] ss:$0 sm:$0xff]  ;;  %s3508_s22 = smov 96   ;;  %s3509_s5 = smov 112   ;;  %vm450_vm3 = vcmask 1043456   ;;  %vm651_vm4 = vcmask 130048  }
  0x5d   :  { %2944 = vmatpush3.bf16.msra.mxu1 %v3255_v1  ;;  %v3738_v25 = vld [vmem:[%s4233_s1] ss:$0 sm:$0xff]  ;;  %s3510_s29 = smov 64   ;;  %s3511_s19 = smov 24   ;;  %vm653_vm5 = vcmask 195584   ;;  %vm1337_vm6 = vcmask 523264  }
  0x5e   :  { %2945 = vmatprep.subr.bf16.mxu1 %v3504_v0 }
  0x61   :  { %2946 = vmatpush3.bf16.msra.mxu1 %v3256_v2 }
  0x62   :  { %2951 = vmatprep.subr.bf16.mxu1 %v3504_v0 }
  0x64   :  { %2948 = vmatmul.mubr.msk.bf16.vlgmr.msra.gmra.mrb[0].mxu1 %vm145_vm1, %v121_v5 }
  0x65   :  { %2953 = vmatprep.mubr.msk.bf16.mxu1 %vm3505_vm0, %v3504_v0 }
 0x137   :  { %v183_v7 = vpop.f32.mrb[0].mxu1 }
 0x138   :  { %v2949_v8 = vpop.f32.mrb[1].mxu1  ;;  %v184_v10 = vadd.f32 %v2749_v6, %v183_v7 }
 0x139   :  { %v186_v9 = vpop.f32.mrb[2].mxu1 }
 0x13a   :  { %v187_v11 = vadd.f32 %v2749_v6, %v186_v9  ;;  %v2950_v12 = vpop.f32.mrb[3].mxu1 }
 0x13c   :  { %v3689_v13 = vpack.c.bf16 %v187_v11, %v184_v10 }
 0x13e   :  { %196 = vrot.lane.b32.xlu1 %v3689_v13, %s3506_s15  ;;  %192 = vrot.lane.b32.xlu0 %v3689_v13, %s3507_s21  ;;  %v3764_v8 = vrot.slane %v3689_v13, 4 }
 0x142   :  { %204 = vrot.lane.b32.xlu1 %v3689_v13, %s3508_s22  ;;  %194 = vrot.lane.b32.xlu0 %v3689_v13, %s3509_s5 }
 0x1b0   :  { %v3699_v14 = vpop.permute.xlu1 %196  ;;  %v3701_v15 = vpop.permute.xlu0 %192 }
 0x1b1   :  { %253 = vrot.lane.b32.xlu0 %v3701_v15, %s3508_s22  ;;  %v3769_v9 = vrot.slane %v3701_v15, 4  ;;  %v3774_v11 = vrot.slane %v3699_v14, 4 }
 0x1b4   :  { %v205_v16 = vpop.permute.xlu1 %204  ;;  %v3705_v17 = vpop.permute.xlu0 %194 }
 0x1b5   :  { %v211_v18 = vsel %vm206_vm2, %v205_v16, 0  ;;  %349 = vrot.lane.b32.xlu0 %v3699_v14, %s3508_s22  ;;  %301 = vrot.lane.b32.xlu1 %v3705_v17, %s3508_s22 }
 0x1b6   :  { %2952 = vmatpush3.bf16.xpose.msra.mxu1 %v211_v18 }
 0x1b7   :  { %2963 = vmatprep.subr.bf16.mxu1 %v3504_v0 }
 0x1bd   :  { %2954 = vmatmul.mubr.msk.bf16.vlgmr.msra.gmra.mrb[4].mxu1 %vm206_vm2, %v3689_v13 }
 0x1be   :  { %2965 = vmatprep.mubr.msk.bf16.mxu1 %vm3505_vm0, %v3504_v0 }
 0x223   :  { %v254_v19 = vpop.permute.xlu0 %253 }
 0x224   :  { %v259_v20 = vsel %vm206_vm2, %v254_v19, 0 }
 0x225   :  { %2958 = vmatpush3.bf16.xpose.msra.mxu0 %v259_v20 }
 0x226   :  { %2969 = vmatprep.subr.bf16.mxu0 %v3504_v0 }
 0x227   :  { %v302_v21 = vpop.permute.xlu1 %301  ;;  %v350_v23 = vpop.permute.xlu0 %349 }
 0x228   :  { %v307_v22 = vsel %vm206_vm2, %v302_v21, 0  ;;  %v355_v24 = vsel %vm206_vm2, %v350_v23, 0 }
 0x229   :  { %2964 = vmatpush3.bf16.xpose.msra.mxu1 %v307_v22 }
 0x22a   :  { %2975 = vmatprep.subr.bf16.mxu1 %v3504_v0 }
 0x22c   :  { %2960 = vmatmul.mubr.msk.bf16.vlgmr.msra.gmra.mrb[0].mxu0 %vm206_vm2, %v3701_v15 }
 0x22d   :  { %2970 = vmatpush3.bf16.xpose.msra.mxu0 %v355_v24  ;;  %2971 = vmatprep.mubr.msk.bf16.mxu0 %vm3505_vm0, %v3504_v0 }
 0x22e   :  { %2981 = vmatprep.subr.bf16.mxu0 %v3504_v0 }
 0x230   :  { %2966 = vmatmul.mubr.msk.bf16.vlgmr.msra.gmra.mrb[8].mxu1 %vm206_vm2, %v3705_v17 }
 0x231   :  { %2977 = vmatprep.mubr.msk.bf16.mxu1 %vm3505_vm0, %v3504_v0 }
 0x234   :  { %2972 = vmatmul.mubr.msk.bf16.vlgmr.msra.gmra.mrb[4].mxu0 %vm206_vm2, %v3699_v14 }
 0x235   :  { %2983 = vmatprep.mubr.msk.bf16.mxu0 %vm3505_vm0, %v3504_v0 }
 0x290   :  { %v247_v26 = vpop.f32.mrb[4].mxu1 }
 0x291   :  { %v248_v27 = vadd.f32 %v3738_v25, %v247_v26  ;;  %v2955_v28 = vpop.f32.mrb[5].mxu1 }
 0x292   :  { %v250_v29 = vpop.f32.mrb[6].mxu1 }
 0x293   :  { %v2956_v30 = vpop.f32.mrb[7].mxu1  ;;  %v397_v31 = vsel %vm206_vm2, %v248_v27, -inf }
 0x294   :  { %398 = vmax.xlane.f32.xlu1 %v397_v31 }
 0x2a5   :  { %494 = vrot.lane.b32.xlu1 %v3701_v15, %s3510_s29 }
 0x2ff   :  { %v295_v32 = vpop.f32.mrb[0].mxu0 }
 0x300   :  { %v296_v33 = vadd.f32 %v3738_v25, %v295_v32  ;;  %v2961_v34 = vpop.f32.mrb[1].mxu0 }
 0x301   :  { %v298_v35 = vpop.f32.mrb[2].mxu0 }
 0x302   :  { %v2962_v36 = vpop.f32.mrb[3].mxu0  ;;  %v400_v37 = vsel %vm206_vm2, %v296_v33, -inf }
 0x303   :  { %401 = vmax.xlane.f32.xlu0 %v400_v37  ;;  %v343_v38 = vpop.f32.mrb[8].mxu1 }
 0x304   :  { %v344_v39 = vadd.f32 %v3738_v25, %v343_v38  ;;  %v2967_v40 = vpop.f32.mrb[9].mxu1 }
 0x305   :  { %v346_v41 = vpop.f32.mrb[10].mxu1 }
 0x306   :  { %v2968_v42 = vpop.f32.mrb[11].mxu1  ;;  %v403_v43 = vsel %vm206_vm2, %v344_v39, -inf }
 0x307   :  { %v391_v44 = vpop.f32.mrb[4].mxu0  ;;  %404 = vmax.xlane.f32.xlu0 %v403_v43 }
 0x308   :  { %v392_v45 = vadd.f32 %v3738_v25, %v391_v44  ;;  %v2973_v46 = vpop.f32.mrb[5].mxu0 }
 0x309   :  { %v394_v47 = vpop.f32.mrb[6].mxu0 }
 0x30a   :  { %v2974_v48 = vpop.f32.mrb[7].mxu0  ;;  %v406_v49 = vsel %vm206_vm2, %v392_v45, -inf }
 0x30b   :  { %407 = vmax.xlane.f32.xlu1 %v406_v49 }
 0x31c   :  { %542 = vrot.lane.b32.xlu1 %v3705_v17, %s3510_s29 }
 0x31d   :  { %445 = vrot.lane.b32.xlu0 %v3689_v13, %s3510_s29 }
 0x321   :  { %v399_v50 = vpop.xlane.xlu1 %398 }
 0x322   :  { %v409_v52 = vsub.f32 %v248_v27, %v399_v50 }
 0x324   :  { %v413_v54 = vmul.f32 1.442695, %v409_v52 }
 0x325   :  { %v495_v51 = vpop.permute.xlu1 %494 }
 0x326   :  { %v500_v53 = vsel %vm450_vm3, %v495_v51, 0  ;;  %3275 = vpow2.f32 %v413_v54 }
 0x327   :  { %2982 = vmatpush3.bf16.msra.mxu0 %v500_v53 }
 0x328   :  { %2993 = vmatprep.subr.bf16.mxu0 %v3504_v0 }
 0x330   :  { %v3276_v55 = vpop.eup %3275 }
 0x331   :  { %v421_v56 = vsel %vm206_vm2, %v3276_v55, 0.0 }
 0x33c   :  { %422 = vadd.xlane.f32.xlu0 %v421_v56 }
 0x352   :  { %590 = vrot.lane.b32.xlu0 %v3699_v14, %s3510_s29  ;;  %v3785_v14 = vrot.slane %v3705_v17, 4 }
 0x390   :  { %v402_v57 = vpop.xlane.xlu0 %401 }
 0x391   :  { %v410_v58 = vsub.f32 %v296_v33, %v402_v57 }
 0x393   :  { %v415_v59 = vmul.f32 1.442695, %v410_v58  ;;  %v3833_v58 = vld [vmem:[%s4233_s1 + $0x1] ss:$0 sm:$0xff] }
 0x394   :  { %v405_v60 = vpop.xlane.xlu0 %404 }
 0x395   :  { %3277 = vpow2.f32 %v415_v59  ;;  %v411_v61 = vsub.f32 %v344_v39, %v405_v60 }
 0x397   :  { %v417_v62 = vmul.f32 1.442695, %v411_v61 }
 0x398   :  { %v446_v63 = vpop.permute.xlu0 %445  ;;  %v408_v10 = vpop.xlane.xlu1 %407 }
 0x399   :  { %3279 = vpow2.f32 %v417_v62  ;;  %v452_v1 = vsel %vm450_vm3, %v446_v63, 0  ;;  %v412_v12 = vsub.f32 %v392_v45, %v408_v10 }
 0x39a   :  { %2976 = vmatpush3.bf16.msra.mxu1 %v452_v1 }
 0x39b   :  { %2987 = vmatprep.subr.bf16.mxu1 %v3504_v0  ;;  %v419_v16 = vmul.f32 1.442695, %v412_v12 }
 0x39c   :  { %v543_v21 = vpop.permute.xlu1 %542 }
 0x39d   :  { %3281 = vpow2.f32 %v419_v16  ;;  %v548_v23 = vsel %vm450_vm3, %v543_v21, 0 }
 0x39f   :  { %v3278_v2 = vpop.eup %3277 }
 0x3a0   :  { %v424_v5 = vsel %vm206_vm2, %v3278_v2, 0.0 }
 0x3a1   :  { %425 = vadd.xlane.f32.xlu1 %v424_v5 }
 0x3a3   :  { %v3280_v6 = vpop.eup %3279 }
 0x3a4   :  { %v427_v7 = vsel %vm206_vm2, %v3280_v6, 0.0 }
 0x3a5   :  { %428 = vadd.xlane.f32.xlu0 %v427_v7 }
 0x3a7   :  { %v3282_v18 = vpop.eup %3281 }
 0x3a8   :  { %v430_v15 = vsel %vm206_vm2, %v3282_v18, 0.0 }
 0x3b2   :  { %662 = vrot.lane.b32.xlu1 %v3764_v8, %s3508_s22 }
 0x3bb   :  { %711 = vrot.lane.b32.xlu0 %v3769_v9, %s3508_s22 }
 0x3bf   :  { %809 = vrot.lane.b32.xlu0 %v3774_v11, %s3508_s22 }
 0x3c9   :  { %v423_v13 = vpop.xlane.xlu0 %422 }
 0x3ca   :  { %3283 = vrcp.f32 %v423_v13 }
 0x3cd   :  { %v591_v24 = vpop.permute.xlu0 %590 }
 0x3ce   :  { %v596_v32 = vsel %vm450_vm3, %v591_v24, 0 }
 0x3d4   :  { %v3284_v19 = vpop.eup %3283 }
 0x3d5   :  { %v437_v20 = vmul.f32 %v3284_v19, %v3276_v55 }
 0x3d6   :  { %431 = vadd.xlane.f32.xlu1 %v430_v15 }
 0x3d7   :  { %v441_v22 = vpack.c.bf16 %v437_v20, %v437_v20 }
 0x3d9   :  { %2978 = vmatmul.mubr.msk.bf16.vlgmr.msra.gmra.mrb[12].mxu1 %vm206_vm2, %v441_v22 }
 0x3da   :  { %2988 = vmatpush3.bf16.msra.mxu1 %v548_v23  ;;  %2989 = vmatprep.mubr.msk.bf16.mxu1 %vm3505_vm0, %v3504_v0 }
 0x3db   :  { %2999 = vmatprep.subr.bf16.mxu1 %v3504_v0 }
 0x3e7   :  { %760 = vrot.lane.b32.xlu1 %v3785_v14, %s3508_s22 }
 0x42e   :  { %v426_v26 = vpop.xlane.xlu1 %425 }
 0x42f   :  { %3285 = vrcp.f32 %v426_v26 }
 0x432   :  { %v429_v27 = vpop.xlane.xlu0 %428  ;;  %v663_v34 = vpop.permute.xlu1 %662 }
 0x433   :  { %3287 = vrcp.f32 %v429_v27  ;;  %v668_v35 = vsel %vm206_vm2, %v663_v34, 0 }
 0x436   :  { %v712_v41 = vpop.permute.xlu0 %711 }
 0x437   :  { %v717_v43 = vsel %vm206_vm2, %v712_v41, 0 }
 0x439   :  { %v3286_v28 = vpop.eup %3285 }
 0x43a   :  { %v438_v29 = vmul.f32 %v3286_v28, %v3278_v2  ;;  %v810_v44 = vpop.permute.xlu0 %809 }
 0x43b   :  { %v815_v45 = vsel %vm206_vm2, %v810_v44, 0 }
 0x43c   :  { %v442_v30 = vpack.c.bf16 %v438_v29, %v438_v29 }
 0x43d   :  { %v3288_v31 = vpop.eup %3287 }
 0x43e   :  { %v439_v33 = vmul.f32 %v3288_v31, %v3280_v6  ;;  %2984 = vmatmul.mubr.msk.bf16.vlgmr.msra.gmra.mrb[8].mxu0 %vm206_vm2, %v442_v30 }
 0x43f   :  { %2994 = vmatpush3.bf16.msra.mxu0 %v596_v32  ;;  %2995 = vmatprep.mubr.msk.bf16.mxu0 %vm3505_vm0, %v3504_v0 }
 0x440   :  { %v443_v17 = vpack.c.bf16 %v439_v33, %v439_v33  ;;  %3005 = vmatprep.subr.bf16.mxu0 %v3504_v0 }
 0x442   :  { %2990 = vmatmul.mubr.msk.bf16.vlgmr.msra.gmra.mrb[16].mxu1 %vm206_vm2, %v443_v17 }
 0x443   :  { %3000 = vmatpush3.bf16.xpose.msra.mxu1 %v668_v35  ;;  %3001 = vmatprep.mubr.msk.bf16.mxu1 %vm3505_vm0, %v3504_v0 }
 0x444   :  { %3011 = vmatprep.subr.bf16.mxu1 %v3504_v0 }
 0x44a   :  { %3002 = vmatmul.mubr.msk.bf16.vlgmr.msra.gmra.mrb[20].mxu1 %vm206_vm2, %v3764_v8 }
 0x44b   :  { %3013 = vmatprep.mubr.msk.bf16.mxu1 %vm3505_vm0, %v3504_v0 }
 0x463   :  { %v432_v36 = vpop.xlane.xlu1 %431 }
 0x464   :  { %3289 = vrcp.f32 %v432_v36 }
 0x467   :  { %v761_v37 = vpop.permute.xlu1 %760 }
 0x468   :  { %v766_v38 = vsel %vm206_vm2, %v761_v37, 0 }
 0x469   :  { %3012 = vmatpush3.bf16.xpose.msra.mxu1 %v766_v38 }
 0x46a   :  { %3023 = vmatprep.subr.bf16.mxu1 %v3504_v0 }
 0x46e   :  { %v3290_v39 = vpop.eup %3289 }
 0x46f   :  { %v440_v40 = vmul.f32 %v3290_v39, %v3282_v18 }
 0x470   :  { %3014 = vmatmul.mubr.msk.bf16.vlgmr.msra.gmra.mrb[24].mxu1 %vm206_vm2, %v3785_v14 }
 0x471   :  { %v444_v42 = vpack.c.bf16 %v440_v40, %v440_v40  ;;  %3025 = vmatprep.mubr.msk.bf16.mxu1 %vm3505_vm0, %v3504_v0 }
 0x473   :  { %2996 = vmatmul.mubr.msk.bf16.vlgmr.msra.gmra.mrb[12].mxu0 %vm206_vm2, %v444_v42 }
 0x474   :  { %3006 = vmatpush3.bf16.xpose.msra.mxu0 %v717_v43  ;;  %3007 = vmatprep.mubr.msk.bf16.mxu0 %vm3505_vm0, %v3504_v0 }
 0x475   :  { %3017 = vmatprep.subr.bf16.mxu0 %v3504_v0 }
 0x47b   :  { %3008 = vmatmul.mubr.msk.bf16.vlgmr.msra.gmra.mrb[16].mxu0 %vm206_vm2, %v3769_v9 }
 0x47c   :  { %3018 = vmatpush3.bf16.xpose.msra.mxu0 %v815_v45  ;;  %3019 = vmatprep.mubr.msk.bf16.mxu0 %vm3505_vm0, %v3504_v0 }
 0x47d   :  { %3029 = vmatprep.subr.bf16.mxu0 %v3504_v0 }
 0x483   :  { %3020 = vmatmul.mubr.msk.bf16.vlgmr.msra.gmra.mrb[20].mxu0 %vm206_vm2, %v3774_v11 }
 0x484   :  { %3031 = vmatprep.mubr.msk.bf16.mxu0 %vm3505_vm0, %v3504_v0 }
 0x4ac   :  { %v3824_v46 = vpop.f32.mrb[12].mxu1 }
 0x4ad   :  { %v2979_v47 = vpop.f32.mrb[13].mxu1 }
 0x4ae   :  { %v491_v48 = vpop.f32.mrb[14].mxu1 }
 0x4af   :  { %v2980_v49 = vpop.f32.mrb[15].mxu1 }
 0x511   :  { %v3826_v50 = vpop.f32.mrb[8].mxu0 }
 0x512   :  { %v2985_v51 = vpop.f32.mrb[9].mxu0 }
 0x513   :  { %v539_v52 = vpop.f32.mrb[10].mxu0 }
 0x514   :  { %v2986_v53 = vpop.f32.mrb[11].mxu0 }
 0x515   :  { %v3828_v54 = vpop.f32.mrb[16].mxu1 }
 0x516   :  { %v2991_v55 = vpop.f32.mrb[17].mxu1 }
 0x517   :  { %v587_v56 = vpop.f32.mrb[18].mxu1 }
 0x518   :  { %v2992_v57 = vpop.f32.mrb[19].mxu1 }
 0x51d   :  { %v704_v59 = vpop.f32.mrb[20].mxu1 }
 0x51e   :  { %v705_v60 = vadd.f32 %v3833_v58, %v704_v59  ;;  %v3003_v61 = vpop.f32.mrb[21].mxu1 }
 0x51f   :  { %v707_v62 = vpop.f32.mrb[22].mxu1 }
 0x520   :  { %v3004_v63 = vpop.f32.mrb[23].mxu1  ;;  %v857_v1 = vsel %vm206_vm2, %v705_v60, -inf }
 0x521   :  { %858 = vmax.xlane.f32.xlu1 %v857_v1 }
 0x543   :  { %v802_v2 = vpop.f32.mrb[24].mxu1 }
 0x544   :  { %v3015_v5 = vpop.f32.mrb[25].mxu1  ;;  %v803_v21 = vadd.f32 %v3833_v58, %v802_v2 }
 0x545   :  { %v805_v6 = vpop.f32.mrb[26].mxu1 }
 0x546   :  { %v3837_v7 = vpop.f32.mrb[12].mxu0  ;;  %v3016_v10 = vpop.f32.mrb[27].mxu1  ;;  %v863_v24 = vsel %vm206_vm2, %v803_v21, -inf }
 0x547   :  { %v2997_v12 = vpop.f32.mrb[13].mxu0 }
 0x548   :  { %v635_v16 = vpop.f32.mrb[14].mxu0 }
 0x549   :  { %v2998_v13 = vpop.f32.mrb[15].mxu0 }
 0x54e   :  { %v753_v18 = vpop.f32.mrb[16].mxu0 }
 0x54f   :  { %v754_v19 = vadd.f32 %v3833_v58, %v753_v18  ;;  %v3009_v20 = vpop.f32.mrb[17].mxu0 }
 0x550   :  { %v756_v15 = vpop.f32.mrb[18].mxu0 }
 0x551   :  { %v3010_v22 = vpop.f32.mrb[19].mxu0  ;;  %v860_v23 = vsel %vm206_vm2, %v754_v19, -inf }
 0x552   :  { %861 = vmax.xlane.f32.xlu0 %v860_v23 }
 0x556   :  { %v851_v26 = vpop.f32.mrb[20].mxu0  ;;  %864 = vmax.xlane.f32.xlu0 %v863_v24  ;;  %v3257_v24 = vld [vmem:[%s4236_s4] sm:$0xff]  }
 0x557   :  { %v852_v27 = vadd.f32 %v3833_v58, %v851_v26  ;;  %v3021_v28 = vpop.f32.mrb[21].mxu0  ;;  %v3258_v26 = vld [vmem:[%s4236_s4 + $0x8] sm:$0xff]  }
 0x558   :  { %v854_v29 = vpop.f32.mrb[22].mxu0 }
 0x559   :  { %v3022_v30 = vpop.f32.mrb[23].mxu0  ;;  %v866_v31 = vsel %vm206_vm2, %v852_v27, -inf }
 0x55a   :  { %867 = vmax.xlane.f32.xlu1 %v866_v31 }
 0x56b   :  { %953 = vrot.lane.b32.xlu1 %v3769_v9, %s3510_s29 }
 0x56c   :  { %905 = vrot.lane.b32.xlu0 %v3764_v8, %s3510_s29 }
 0x5ae   :  { %v859_v32 = vpop.xlane.xlu1 %858 }
 0x5af   :  { %v869_v33 = vsub.f32 %v705_v60, %v859_v32 }
 0x5b1   :  { %v873_v34 = vmul.f32 1.442695, %v869_v33 }
 0x5b3   :  { %3291 = vpow2.f32 %v873_v34 }
 0x5bd   :  { %v3292_v17 = vpop.eup %3291 }
 0x5be   :  { %v881_v35 = vsel %vm206_vm2, %v3292_v17, 0.0 }
 0x5bf   :  { %882 = vadd.xlane.f32.xlu0 %v881_v35 }
 0x5df   :  { %v862_v36 = vpop.xlane.xlu0 %861 }
 0x5e0   :  { %v870_v37 = vsub.f32 %v754_v19, %v862_v36 }
 0x5e2   :  { %v875_v38 = vmul.f32 1.442695, %v870_v37 }
 0x5e3   :  { %v865_v39 = vpop.xlane.xlu0 %864 }
 0x5e4   :  { %3293 = vpow2.f32 %v875_v38  ;;  %v871_v40 = vsub.f32 %v803_v21, %v865_v39 }
 0x5e6   :  { %v877_v41 = vmul.f32 1.442695, %v871_v40 }
 0x5e7   :  { %v868_v42 = vpop.xlane.xlu1 %867  ;;  %v906_v9 = vpop.permute.xlu0 %905 }
 0x5e8   :  { %3295 = vpow2.f32 %v877_v41  ;;  %v872_v43 = vsub.f32 %v852_v27, %v868_v42  ;;  %v911_v8 = vsel %vm450_vm3, %v906_v9, 0 }
 0x5e9   :  { %3024 = vmatpush3.bf16.msra.mxu1 %v911_v8 }
 0x5ea   :  { %v879_v44 = vmul.f32 1.442695, %v872_v43  ;;  %3035 = vmatprep.subr.bf16.mxu1 %v3504_v0 }
 0x5eb   :  { %v954_v45 = vpop.permute.xlu1 %953 }
 0x5ec   :  { %3297 = vpow2.f32 %v879_v44  ;;  %v959_v47 = vsel %vm450_vm3, %v954_v45, 0 }
 0x5ed   :  { %3030 = vmatpush3.bf16.msra.mxu0 %v959_v47 }
 0x5ee   :  { %v3294_v48 = vpop.eup %3293  ;;  %3041 = vmatprep.subr.bf16.mxu0 %v3504_v0 }
 0x5ef   :  { %v884_v49 = vsel %vm206_vm2, %v3294_v48, 0.0 }
 0x5f0   :  { %885 = vadd.xlane.f32.xlu1 %v884_v49 }
 0x5f2   :  { %v3296_v51 = vpop.eup %3295 }
 0x5f3   :  { %v887_v52 = vsel %vm206_vm2, %v3296_v51, 0.0 }
 0x5f4   :  { %888 = vadd.xlane.f32.xlu0 %v887_v52 }
 0x5f6   :  { %v3298_v53 = vpop.eup %3297 }
 0x5f7   :  { %v890_v55 = vsel %vm206_vm2, %v3298_v53, 0.0 }
 0x5f8   :  { %891 = vadd.xlane.f32.xlu1 %v890_v55  ;;  %v2771_v55 = vld [vmem:[#allocation5] ss:$0 sm:$0xff] }
 0x609   :  { %1001 = vrot.lane.b32.xlu1 %v3785_v14, %s3510_s29 }
 0x60a   :  { %1049 = vrot.lane.b32.xlu0 %v3774_v11, %s3510_s29 }
 0x64c   :  { %v883_v56 = vpop.xlane.xlu0 %882 }
 0x64d   :  { %3299 = vrcp.f32 %v883_v56 }
 0x657   :  { %v3300_v57 = vpop.eup %3299 }
 0x658   :  { %v897_v59 = vmul.f32 %v3300_v57, %v3292_v17 }
 0x65a   :  { %v901_v60 = vpack.c.bf16 %v897_v59, %v897_v59 }
 0x65c   :  { %3026 = vmatmul.mubr.msk.bf16.vlgmr.msra.gmra.mrb[28].mxu1 %vm206_vm2, %v901_v60 }
 0x65d   :  { %3037 = vmatprep.mubr.msk.bf16.mxu1 %vm3505_vm0, %v3504_v0 }
 0x67d   :  { %v886_v61 = vpop.xlane.xlu1 %885 }
 0x67e   :  { %3301 = vrcp.f32 %v886_v61 }
 0x681   :  { %v889_v62 = vpop.xlane.xlu0 %888 }
 0x682   :  { %3303 = vrcp.f32 %v889_v62 }
 0x685   :  { %v892_v63 = vpop.xlane.xlu1 %891  ;;  %v1050_v11 = vpop.permute.xlu0 %1049 }
 0x686   :  { %3305 = vrcp.f32 %v892_v63  ;;  %v1055_v16 = vsel %vm450_vm3, %v1050_v11, 0 }
 0x688   :  { %v3302_v14 = vpop.eup %3301 }
 0x689   :  { %v898_v1 = vmul.f32 %v3302_v14, %v3294_v48  ;;  %v1002_v2 = vpop.permute.xlu1 %1001 }
 0x68a   :  { %v1007_v5 = vsel %vm450_vm3, %v1002_v2, 0 }
 0x68b   :  { %3036 = vmatpush3.bf16.msra.mxu1 %v1007_v5  ;;  %v902_v6 = vpack.c.bf16 %v898_v1, %v898_v1 }
 0x68c   :  { %v3304_v10 = vpop.eup %3303  ;;  %3047 = vmatprep.subr.bf16.mxu1 %v3504_v0 }
 0x68d   :  { %v899_v12 = vmul.f32 %v3304_v10, %v3296_v51  ;;  %3032 = vmatmul.mubr.msk.bf16.vlgmr.msra.gmra.mrb[24].mxu0 %vm206_vm2, %v902_v6 }
 0x68e   :  { %3042 = vmatpush3.bf16.msra.mxu0 %v1055_v16  ;;  %3043 = vmatprep.mubr.msk.bf16.mxu0 %vm3505_vm0, %v3504_v0 }
 0x68f   :  { %v903_v13 = vpack.c.bf16 %v899_v12, %v899_v12  ;;  %3055 = vmatprep.subr.bf16.mxu0 %v3504_v0 }
 0x690   :  { %v3306_v18 = vpop.eup %3305 }
 0x691   :  { %v900_v19 = vmul.f32 %v3306_v18, %v3298_v53  ;;  %3038 = vmatmul.mubr.msk.bf16.vlgmr.msra.gmra.mrb[32].mxu1 %vm206_vm2, %v903_v13 }
 0x692   :  { %3051 = vmatprep.mubr.msk.bf16.mxu1 %vm3505_vm0, %v3504_v0  ;;  %3048 = vmatpush3.bf16.msra.mxu1 %v3257_v24 }
 0x693   :  { %v904_v20 = vpack.c.bf16 %v900_v19, %v900_v19  ;;  %3049 = vmatprep.subr.bf16.mxu1 %v3504_v0  ;;  %v3260_v19 = vld [vmem:[%s4240_s8 + $0x8] sm:$0xff]  }
 0x695   :  { %3044 = vmatmul.mubr.msk.bf16.vlgmr.msra.gmra.mrb[28].mxu0 %vm206_vm2, %v904_v20  ;;  %v3261_v20 = vld [vmem:[%s4242_s10] sm:$0xff]  }
 0x696   :  { %3059 = vmatprep.mubr.msk.bf16.mxu0 %vm3505_vm0, %v3504_v0  ;;  %3050 = vmatpush3.bf16.msra.mxu1 %v3258_v26 }
 0x697   :  { %3063 = vmatprep.subr.bf16.mxu1 %v3504_v0 }
 0x72f   :  { %v947_v15 = vpop.f32.mrb[28].mxu1 }
 0x730   :  { %v3027_v21 = vpop.f32.mrb[29].mxu1 }
 0x731   :  { %v950_v22 = vpop.f32.mrb[30].mxu1 }
 0x732   :  { %v3028_v23 = vpop.f32.mrb[31].mxu1 }
 0x760   :  { %v995_v27 = vpop.f32.mrb[24].mxu0 }
 0x761   :  { %v3225_v28 = vpack.i.bf16 %v995_v27, %v3826_v50  ;;  %v3033_v29 = vpop.f32.mrb[25].mxu0 }
 0x762   :  { %v998_v30 = vpop.f32.mrb[26].mxu0 }
 0x763   :  { %3226 = vrot.lane.b32.xlu1 %v3225_v28, %s3501_s28  ;;  %v3034_v31 = vpop.f32.mrb[27].mxu0  ;;  %v2775_v30 = vld [vmem:[#allocation7] ss:$0 sm:$0xff] }
 0x764   :  { %v1043_v32 = vpop.f32.mrb[32].mxu1 }
 0x765   :  { %v3230_v33 = vpack.i.bf16 %v1043_v32, %v3828_v54  ;;  %v3039_v34 = vpop.f32.mrb[33].mxu1 }
 0x766   :  { %v1046_v17 = vpop.f32.mrb[34].mxu1  ;;  %v2776_v34 = vld [vmem:[#allocation8] ss:$0 sm:$0xff] }
 0x767   :  { %3231 = vrot.lane.b32.xlu0 %v3230_v33, %s3496_s23  ;;  %v3040_v35 = vpop.f32.mrb[35].mxu1 }
 0x768   :  { %v1091_v36 = vpop.f32.mrb[28].mxu0 }
 0x769   :  { %v3235_v37 = vpack.i.bf16 %v1091_v36, %v3837_v7  ;;  %v3045_v50 = vpop.f32.mrb[29].mxu0 }
 0x76a   :  { %v1094_v38 = vpop.f32.mrb[30].mxu0  ;;  %v3263_v50 = vld [vmem:[%s4242_s10 + $0x10] sm:$0xff]  }
 0x76b   :  { %3236 = vrot.lane.b32.xlu1 %v3235_v37, %s3511_s19  ;;  %v3046_v39 = vpop.f32.mrb[31].mxu0  ;;  %v3264_v38 = vld [vmem:[%s4242_s10 + $0x18] sm:$0xff]  }
 0x76c   :  { %v2777_v39 = vld [vmem:[#allocation10] ss:$0 sm:$0xff] }
 0x7d5   :  { %v3227_v40 = vpop.permute.xlu1 %3226 }
 0x7d6   :  { %v3229_v42 = vunpack.i.h.bf16 %v3227_v40  ;;  %v3228_v9 = vunpack.i.l.bf16 %v3227_v40 }
 0x7d8   :  { %v650_v44 = vsel %vm206_vm2, %v3824_v46, %v3228_v9  ;;  %v1109_v7 = vsel %vm206_vm2, %v947_v15, %v3229_v42  ;;  %v3262_v15 = vld [vmem:[%s4242_s10 + $0x8] sm:$0xff]  }
 0x7d9   :  { %v3232_v41 = vpop.permute.xlu0 %3231 }
 0x7da   :  { %v3234_v43 = vunpack.i.h.bf16 %v3232_v41  ;;  %v3233_v54 = vunpack.i.l.bf16 %v3232_v41 }
 0x7dc   :  { %v1110_v48 = vsel %vm651_vm4, %v1109_v7, %v3234_v43  ;;  %v652_v49 = vsel %vm651_vm4, %v650_v44, %v3233_v54 }
 0x7dd   :  { %v3237_v8 = vpop.permute.xlu1 %3236 }
 0x7de   :  { %v3239_v45 = vunpack.i.h.bf16 %v3237_v8  ;;  %v3238_v47 = vunpack.i.l.bf16 %v3237_v8 }
 0x7e0   :  { %v654_v51 = vsel %vm653_vm5, %v652_v49, %v3238_v47  ;;  %v1111_v52 = vsel %vm653_vm5, %v1110_v48, %v3239_v45  ;;  %v2781_v45 = vld [vmem:[%s4243_s11] ss:$0 sm:$0xff] }
 0x7e1   :  { %v1112_v53 = vpack.c.bf16 %v1111_v52, %v654_v51 }
 0x7e3   :  { %3052 = vmatmul.mubr.msk.bf16.vlgmr.msra.gmra.mrb[36].mxu1 %vm145_vm1, %v1112_v53 }
 0x7e4   :  { %3071 = vmatprep.mubr.msk.bf16.mxu1 %vm3505_vm0, %v3504_v0  ;;  %3064 = vmatpush3.bf16.msra.mxu1 %v3261_v20  ;;  %v2787_v20 = vld [vmem:[%s4244_s12] ss:$0 sm:$0xff] }
 0x7e5   :  { %3065 = vmatprep.subr.bf16.mxu1 %v3504_v0 }
 0x7e8   :  { %3066 = vmatpush3.bf16.msra.mxu1 %v3262_v15 }
 0x7e9   :  { %3067 = vmatprep.subr.bf16.mxu1 %v3504_v0 }
 0x7ec   :  { %3068 = vmatpush3.bf16.msra.mxu1 %v3263_v50 }
 0x7ed   :  { %3069 = vmatprep.subr.bf16.mxu1 %v3504_v0 }
 0x7f0   :  { %3070 = vmatpush3.bf16.msra.mxu1 %v3264_v38 }
 0x7f1   :  { %3089 = vmatprep.subr.bf16.mxu1 %v3504_v0 }
 0x8b6   :  { %v1173_v46 = vpop.f32.mrb[36].mxu1 }
 0x8b7   :  { %v1174_v56 = vadd.f32 %v2771_v55, %v1173_v46  ;;  %v3053_v57 = vpop.f32.mrb[37].mxu1 }
 0x8b8   :  { %v1176_v59 = vpop.f32.mrb[38].mxu1 }
 0x8b9   :  { %v1177_v60 = vadd.f32 %v2771_v55, %v1176_v59  ;;  %v3054_v61 = vpop.f32.mrb[39].mxu1  ;;  %v1180_v62 = vadd.f32 %v1174_v56, %v3675_v3 }
 0x8bb   :  { %v1184_v63 = vsel %vm145_vm1, %v1180_v62, 0.0  ;;  %v1181_v14 = vadd.f32 %v1177_v60, %v3677_v4  ;;  %v3259_v4 = vld [vmem:[%s4240_s8] sm:$0xff]  }
 0x8bc   :  { %1185 = vadd.xlane.f32.xlu0 %v1184_v63  ;;  %3056 = vmatpush3.bf16.msra.mxu0 %v3259_v4 }
 0x8bd   :  { %v1187_v1 = vsel %vm145_vm1, %v1181_v14, 0.0  ;;  %3057 = vmatprep.subr.bf16.mxu0 %v3504_v0 }
 0x8be   :  { %1188 = vadd.xlane.f32.xlu1 %v1187_v1 }
 0x8c0   :  { %3058 = vmatpush3.bf16.msra.mxu0 %v3260_v19 }
 0x8c1   :  { %3075 = vmatprep.subr.bf16.mxu0 %v3504_v0 }
 0x949   :  { %v1186_v2 = vpop.xlane.xlu0 %1185 }
 0x94a   :  { %v1191_v11 = vmul.f32 0.03125, %v1186_v2 }
 0x94b   :  { %v1189_v5 = vpop.xlane.xlu1 %1188 }
 0x94c   :  { %v1193_v6 = vsub.f32 %v1180_v62, %v1191_v11  ;;  %v1192_v10 = vmul.f32 0.03125, %v1189_v5 }
 0x94e   :  { %v1194_v12 = vsub.f32 %v1181_v14, %v1192_v10  ;;  %v1195_v16 = vmul.f32 %v1193_v6, %v1193_v6  ;;  %v3266_v10 = vld [vmem:[%s4234_s2 + $0x18] sm:$0xff]  }
 0x950   :  { %v1197_v13 = vsel %vm145_vm1, %v1195_v16, 0.0  ;;  %v1196_v18 = vmul.f32 %v1194_v12, %v1194_v12 }
 0x951   :  { %1198 = vadd.xlane.f32.xlu0 %v1197_v13 }
 0x952   :  { %v1200_v3 = vsel %vm145_vm1, %v1196_v18, 0.0 }
 0x955   :  { %1201 = vadd.xlane.f32.xlu0 %v1200_v3 }
 0x9de   :  { %v1199_v21 = vpop.xlane.xlu0 %1198 }
 0x9df   :  { %v1203_v22 = vmul.f32 0.03125, %v1199_v21 }
 0x9e1   :  { %v1205_v23 = vadd.f32 1e-05, %v1203_v22 }
 0x9e2   :  { %v1202_v24 = vpop.xlane.xlu0 %1201 }
 0x9e3   :  { %3307 = vrsqrt.f32 %v1205_v23  ;;  %v1204_v26 = vmul.f32 0.03125, %v1202_v24  ;;  %v2788_v24 = vld [vmem:[%s4245_s13] ss:$0 sm:$0xff] }
 0x9e5   :  { %v1206_v27 = vadd.f32 1e-05, %v1204_v26 }
 0x9e7   :  { %3309 = vrsqrt.f32 %v1206_v27 }
 0x9ed   :  { %v3308_v28 = vpop.eup %3307 }
 0x9ee   :  { %v1209_v29 = vmul.f32 %v3308_v28, %v1193_v6  ;;  %v3265_v6 = vld [vmem:[%s4234_s2 + $0x10] sm:$0xff]   ;;  %s3512_s2 = smov [#allocation11]  }
 0x9ef   :  { %s2735_s16 = sshll.u32 %s3512_s2, 4  ;;  %s2736_s16 = int_to_ptr.vmem [resolvable:$true] %s2735_s16 }
 0x9f0   :  { %v1217_v32 = vmul.f32 %v2775_v30, %v1209_v29  ;;  %s3465_s17 = scalar_lea.vmem %s2736_s16, 256  ;;  %p3470_p13 = scmp.lt.s32.totalorder %s2736_s16, %s2736_s16 }
 0x9f1   :  { %v3310_v31 = vpop.eup %3309  ;;  %p3466_p12 = scmp.ne.s32.totalorder %s2736_s16, %s3465_s17  ;;  %p3471_p0 = scmp.lt.s32.totalorder %s3465_s17, %s3465_s17 }
 0x9f2   :  { %v1210_v33 = vmul.f32 %v3310_v31, %v1194_v12  ;;  %v1225_v35 = vadd.f32 %v2776_v34, %v1217_v32 }
 0x9f3   :  { %p3472_p1 = por %p3471_p0, %p3470_p13 }
 0x9f4   :  { %v1218_v17 = vmul.f32 %v2775_v30, %v1210_v33  ;;  %v2794_v30 = vld [vmem:[%s4235_s3 + $0x1] ss:$0 sm:$0xff] }
 0x9f5   :  { %p3473_p2 = pnand %p3472_p1, %p3466_p12 }
 0x9f6   :  { %v1226_v36 = vadd.f32 %v2776_v34, %v1218_v17 }
 0x9f8   :  { %v1227_v37 = vpack.c.bf16 %v1226_v36, %v1225_v35 }
 0x9fa   :  { %3060 = vmatmul.mubr.msk.bf16.vlgmr.msra.gmra.mrb[32].mxu0 %vm145_vm1, %v1227_v37 }
 0x9fb   :  { %3079 = vmatprep.mubr.msk.bf16.mxu0 %vm3505_vm0, %v3504_v0  ;;  %3076 = vmatpush3.bf16.msra.mxu0 %v3265_v6 }
 0x9fc   :  { %3077 = vmatprep.subr.bf16.mxu0 %v3504_v0 }
 0x9ff   :  { %3078 = vmatpush3.bf16.msra.mxu0 %v3266_v10 }
 0xa00   :  { %3083 = vmatprep.subr.bf16.mxu0 %v3504_v0 }
 0xacd   :  { %v1288_v40 = vpop.f32.mrb[32].mxu0 }
 0xace   :  { %v1289_v41 = vadd.f32 %v2777_v39, %v1288_v40  ;;  %v3061_v42 = vpop.f32.mrb[33].mxu0 }
 0xacf   :  { %v1291_v9 = vpop.f32.mrb[34].mxu0 }
 0xad0   :  { %v1292_v43 = vadd.f32 %v2777_v39, %v1291_v9  ;;  %v3062_v54 = vpop.f32.mrb[35].mxu0  ;;  %v1295_v8 = vmax.f32 %v1289_v41, 0.0 }
 0xad2   :  { %v1296_v44 = vmax.f32 %v1292_v43, 0.0 }
 0xad4   :  { %v1297_v7 = vpack.c.bf16 %v1296_v44, %v1295_v8 }
 0xad6   :  { %3072 = vmatmul.mubr.msk.bf16.vlgmr.msra.gmra.mrb[40].mxu1 %vm1337_vm6, %v1297_v7 }
 0xad7   :  { %3091 = vmatprep.mubr.msk.bf16.mxu1 %vm3505_vm0, %v3504_v0 }
 0xba9   :  { %v1375_v47 = vpop.f32.mrb[40].mxu1 }
 0xbaa   :  { %v1376_v48 = vadd.f32 %v2781_v45, %v1375_v47  ;;  %v3073_v49 = vpop.f32.mrb[41].mxu1 }
 0xbab   :  { %v1378_v51 = vpop.f32.mrb[42].mxu1 }
 0xbac   :  { %v1379_v52 = vadd.f32 %v2781_v45, %v1378_v51  ;;  %v3074_v53 = vpop.f32.mrb[43].mxu1  ;;  %v1382_v55 = vadd.f32 %v1376_v48, %v1225_v35 }
 0xbae   :  { %v1386_v46 = vsel %vm145_vm1, %v1382_v55, 0.0  ;;  %v1383_v56 = vadd.f32 %v1379_v52, %v1226_v36 }
 0xbaf   :  { %1387 = vadd.xlane.f32.xlu1 %v1386_v46 }
 0xbb0   :  { %v1389_v57 = vsel %vm145_vm1, %v1383_v56, 0.0 }
 0xbb1   :  { %1390 = vadd.xlane.f32.xlu0 %v1389_v57 }
 0xc3c   :  { %v1388_v59 = vpop.xlane.xlu1 %1387 }
 0xc3d   :  { %v1392_v60 = vmul.f32 0.03125, %v1388_v59 }
 0xc3e   :  { %v1391_v61 = vpop.xlane.xlu0 %1390 }
 0xc3f   :  { %v1394_v62 = vsub.f32 %v1382_v55, %v1392_v60  ;;  %v1393_v63 = vmul.f32 0.03125, %v1391_v61 }
 0xc41   :  { %v1395_v14 = vsub.f32 %v1383_v56, %v1393_v63  ;;  %v1396_v1 = vmul.f32 %v1394_v62, %v1394_v62 }
 0xc43   :  { %v1398_v2 = vsel %vm145_vm1, %v1396_v1, 0.0  ;;  %v1397_v11 = vmul.f32 %v1395_v14, %v1395_v14 }
 0xc44   :  { %1399 = vadd.xlane.f32.xlu1 %v1398_v2 }
 0xc45   :  { %v1401_v5 = vsel %vm145_vm1, %v1397_v11, 0.0 }
 0xc46   :  { %1402 = vadd.xlane.f32.xlu0 %v1401_v5 }
 0xcd1   :  { %v1400_v12 = vpop.xlane.xlu1 %1399 }
 0xcd2   :  { %v1404_v16 = vmul.f32 0.03125, %v1400_v12 }
 0xcd3   :  { %v1403_v13 = vpop.xlane.xlu0 %1402 }
 0xcd4   :  { %v1406_v18 = vadd.f32 1e-05, %v1404_v16  ;;  %v1405_v3 = vmul.f32 0.03125, %v1403_v13 }
 0xcd6   :  { %3311 = vrsqrt.f32 %v1406_v18  ;;  %v1407_v4 = vadd.f32 1e-05, %v1405_v3 }
 0xcd8   :  { %3313 = vrsqrt.f32 %v1407_v4 }
 0xce0   :  { %v3312_v19 = vpop.eup %3311 }
 0xce1   :  { %v1410_v15 = vmul.f32 %v3312_v19, %v1394_v62 }
 0xce2   :  { %v3314_v21 = vpop.eup %3313 }
 0xce3   :  { %v1418_v22 = vmul.f32 %v2787_v20, %v1410_v15  ;;  %v1411_v23 = vmul.f32 %v3314_v21, %v1395_v14 }
 0xce5   :  { %v1419_v26 = vmul.f32 %v2787_v20, %v1411_v23  ;;  %v3958_v27 = vadd.f32 %v2788_v24, %v1418_v22 }
 0xce7   :  { %v3960_v28 = vadd.f32 %v2788_v24, %v1419_v26 }
 0xce9   :  { %v1428_v29 = vpack.c.bf16 %v3960_v28, %v3958_v27 }
 0xceb   :  { %3080 = vmatmul.mubr.msk.bf16.vlgmr.msra.gmra.mrb[36].mxu0 %vm145_vm1, %v1428_v29 }
 0xcec   :  { %3085 = vmatprep.mubr.msk.bf16.mxu0 %vm3505_vm0, %v3504_v0 }
 0xdbe   :  { %v1491_v31 = vpop.f32.mrb[36].mxu0 }
 0xdbf   :  { %v3081_v32 = vpop.f32.mrb[37].mxu0  ;;  %v1492_v34 = vadd.f32 %v2794_v30, %v1491_v31 }
 0xdc0   :  { %v1494_v33 = vpop.f32.mrb[38].mxu0 }
 0xdc1   :  { %v1495_v17 = vadd.f32 %v2794_v30, %v1494_v33  ;;  %v3082_v35 = vpop.f32.mrb[39].mxu0 }
 0xdc3   :  { %v3970_v36 = vpack.c.bf16 %v1495_v17, %v1492_v34 }
 0xdc5   :  { %1502 = vrot.lane.b32.xlu0 %v3970_v36, %s3509_s5  ;;  %1500 = vrot.lane.b32.xlu1 %v3970_v36, %s3507_s21  ;;  %v4040_v32 = vrot.slane %v3970_v36, 4 }
 0xdc9   :  { %1504 = vrot.lane.b32.xlu1 %v3970_v36, %s3506_s15 }
 0xdcd   :  { %1506 = vrot.lane.b32.xlu1 %v3970_v36, %s3508_s22 }
 0xe37   :  { %v3980_v37 = vpop.permute.xlu0 %1502  ;;  %v3982_v50 = vpop.permute.xlu1 %1500 }
 0xe38   :  { %1602 = vrot.lane.b32.xlu1 %v3980_v37, %s3508_s22  ;;  %1554 = vrot.lane.b32.xlu0 %v3982_v50, %s3508_s22  ;;  %v4045_v33 = vrot.slane %v3982_v50, 4 }
 0xe3b   :  { %v3988_v38 = vpop.permute.xlu1 %1504 }
 0xe3c   :  { %1650 = vrot.lane.b32.xlu0 %v3988_v38, %s3508_s22  ;;  %v4050_v17 = vrot.slane %v3988_v38, 4 }
 0xe3f   :  { %v1507_v39 = vpop.permute.xlu1 %1506 }
 0xe40   :  { %v1512_v40 = vsel %vm206_vm2, %v1507_v39, 0 }
 0xe41   :  { %3084 = vmatpush3.bf16.xpose.msra.mxu0 %v1512_v40 }
 0xe42   :  { %3095 = vmatprep.subr.bf16.mxu0 %v3504_v0 }
 0xe48   :  { %3086 = vmatmul.mubr.msk.bf16.vlgmr.msra.gmra.mrb[40].mxu0 %vm206_vm2, %v3970_v36 }
 0xe49   :  { %3097 = vmatprep.mubr.msk.bf16.mxu0 %vm3505_vm0, %v3504_v0 }
 0xeaa   :  { %v1555_v41 = vpop.permute.xlu0 %1554  ;;  %v1603_v42 = vpop.permute.xlu1 %1602 }
 0xeab   :  { %v1560_v9 = vsel %vm206_vm2, %v1555_v41, 0  ;;  %v1608_v43 = vsel %vm206_vm2, %v1603_v42, 0 }
 0xeac   :  { %3090 = vmatpush3.bf16.xpose.msra.mxu1 %v1560_v9  ;;  %3096 = vmatpush3.bf16.xpose.msra.mxu0 %v1608_v43 }
 0xead   :  { %3101 = vmatprep.subr.bf16.mxu1 %v3504_v0  ;;  %3107 = vmatprep.subr.bf16.mxu0 %v3504_v0 }
 0xeae   :  { %v1651_v54 = vpop.permute.xlu0 %1650 }
 0xeaf   :  { %v1656_v8 = vsel %vm206_vm2, %v1651_v54, 0 }
 0xeb3   :  { %3092 = vmatmul.mubr.msk.bf16.vlgmr.msra.gmra.mrb[44].mxu1 %vm206_vm2, %v3982_v50  ;;  %3098 = vmatmul.mubr.msk.bf16.vlgmr.msra.gmra.mrb[44].mxu0 %vm206_vm2, %v3980_v37 }
 0xeb4   :  { %3102 = vmatpush3.bf16.xpose.msra.mxu1 %v1656_v8  ;;  %3103 = vmatprep.mubr.msk.bf16.mxu1 %vm3505_vm0, %v3504_v0 }
 0xeb5   :  { %3113 = vmatprep.subr.bf16.mxu1 %v3504_v0  ;;  %3109 = vmatprep.mubr.msk.bf16.mxu0 %vm3505_vm0, %v3504_v0 }
 0xebb   :  { %3104 = vmatmul.mubr.msk.bf16.vlgmr.msra.gmra.mrb[48].mxu1 %vm206_vm2, %v3988_v38 }
 0xebc   :  { %3115 = vmatprep.mubr.msk.bf16.mxu1 %vm3505_vm0, %v3504_v0 }
 0xf1b   :  { %v1548_v44 = vpop.f32.mrb[40].mxu0 }
 0xf1c   :  { %v1549_v7 = vadd.f32 %v3738_v25, %v1548_v44  ;;  %v3087_v45 = vpop.f32.mrb[41].mxu0 }
 0xf1d   :  { %v1551_v47 = vpop.f32.mrb[42].mxu0 }
 0xf1e   :  { %v3088_v48 = vpop.f32.mrb[43].mxu0  ;;  %v1698_v49 = vsel %vm206_vm2, %v1549_v7, -inf }
 0xf1f   :  { %1699 = vmax.xlane.f32.xlu1 %v1698_v49 }
 0xf30   :  { %1794 = vrot.lane.b32.xlu1 %v3982_v50, %s3510_s29 }
 0xf86   :  { %v1596_v51 = vpop.f32.mrb[44].mxu1  ;;  %v1644_v52 = vpop.f32.mrb[44].mxu0 }
 0xf87   :  { %v1597_v53 = vadd.f32 %v3738_v25, %v1596_v51  ;;  %v3093_v55 = vpop.f32.mrb[45].mxu1  ;;  %v3099_v46 = vpop.f32.mrb[45].mxu0  ;;  %v1645_v59 = vadd.f32 %v3738_v25, %v1644_v52 }
 0xf88   :  { %v1599_v56 = vpop.f32.mrb[46].mxu1  ;;  %v1647_v57 = vpop.f32.mrb[46].mxu0 }
 0xf89   :  { %v3094_v60 = vpop.f32.mrb[47].mxu1  ;;  %v3100_v61 = vpop.f32.mrb[47].mxu0  ;;  %v1701_v62 = vsel %vm206_vm2, %v1597_v53, -inf  ;;  %v1704_v63 = vsel %vm206_vm2, %v1645_v59, -inf }
 0xf8a   :  { %1702 = vmax.xlane.f32.xlu0 %v1701_v62 }
 0xf8e   :  { %1705 = vmax.xlane.f32.xlu0 %v1704_v63  ;;  %v1692_v14 = vpop.f32.mrb[48].mxu1 }
 0xf8f   :  { %v1693_v1 = vadd.f32 %v3738_v25, %v1692_v14  ;;  %v3105_v2 = vpop.f32.mrb[49].mxu1 }
 0xf90   :  { %v1695_v11 = vpop.f32.mrb[50].mxu1 }
 0xf91   :  { %v3106_v5 = vpop.f32.mrb[51].mxu1  ;;  %v1707_v6 = vsel %vm206_vm2, %v1693_v1, -inf }
 0xf92   :  { %1708 = vmax.xlane.f32.xlu1 %v1707_v6 }
 0xfa3   :  { %1842 = vrot.lane.b32.xlu1 %v3980_v37, %s3510_s29 }
 0xfa4   :  { %1746 = vrot.lane.b32.xlu0 %v3970_v36, %s3510_s29 }
 0xfac   :  { %v1700_v10 = vpop.xlane.xlu1 %1699 }
 0xfad   :  { %v1710_v12 = vsub.f32 %v1549_v7, %v1700_v10 }
 0xfaf   :  { %v1714_v13 = vmul.f32 1.442695, %v1710_v12 }
 0xfb0   :  { %v1795_v16 = vpop.permute.xlu1 %1794 }
 0xfb1   :  { %v1800_v18 = vsel %vm450_vm3, %v1795_v16, 0  ;;  %3315 = vpow2.f32 %v1714_v13 }
 0xfb2   :  { %3114 = vmatpush3.bf16.msra.mxu1 %v1800_v18 }
 0xfb3   :  { %3125 = vmatprep.subr.bf16.mxu1 %v3504_v0 }
 0xfbb   :  { %v3316_v25 = vpop.eup %3315 }
 0xfbc   :  { %v1722_v3 = vsel %vm206_vm2, %v3316_v25, 0.0 }
 0xfc3   :  { %1723 = vadd.xlane.f32.xlu0 %v1722_v3 }
 0xfd9   :  { %1890 = vrot.lane.b32.xlu0 %v3988_v38, %s3510_s29  ;;  %v4061_v38 = vrot.slane %v3980_v37, 4 }
0x1017   :  { %v1703_v4 = vpop.xlane.xlu0 %1702 }
0x1018   :  { %v1711_v19 = vsub.f32 %v1597_v53, %v1703_v4 }
0x101a   :  { %v1716_v20 = vmul.f32 1.442695, %v1711_v19 }
0x101b   :  { %v1706_v15 = vpop.xlane.xlu0 %1705 }
0x101c   :  { %3317 = vpow2.f32 %v1716_v20  ;;  %v1712_v21 = vsub.f32 %v1645_v59, %v1706_v15 }
0x101e   :  { %v1718_v22 = vmul.f32 1.442695, %v1712_v21 }
0x101f   :  { %v1747_v23 = vpop.permute.xlu0 %1746  ;;  %v1709_v34 = vpop.xlane.xlu1 %1708 }
0x1020   :  { %3319 = vpow2.f32 %v1718_v22  ;;  %v1752_v24 = vsel %vm450_vm3, %v1747_v23, 0  ;;  %v1713_v35 = vsub.f32 %v1693_v1, %v1709_v34 }
0x1021   :  { %3108 = vmatpush3.bf16.msra.mxu0 %v1752_v24 }
0x1022   :  { %3119 = vmatprep.subr.bf16.mxu0 %v3504_v0  ;;  %v1720_v39 = vmul.f32 1.442695, %v1713_v35 }
0x1023   :  { %v1843_v9 = vpop.permute.xlu1 %1842 }
0x1024   :  { %3321 = vpow2.f32 %v1720_v39  ;;  %v1848_v54 = vsel %vm450_vm3, %v1843_v9, 0 }
0x1026   :  { %v3318_v26 = vpop.eup %3317 }
0x1027   :  { %v1725_v29 = vsel %vm206_vm2, %v3318_v26, 0.0 }
0x1028   :  { %1726 = vadd.xlane.f32.xlu1 %v1725_v29 }
0x102a   :  { %v3320_v30 = vpop.eup %3319 }
0x102b   :  { %v1728_v31 = vsel %vm206_vm2, %v3320_v30, 0.0 }
0x102c   :  { %1729 = vadd.xlane.f32.xlu0 %v1728_v31 }
0x102e   :  { %v3322_v40 = vpop.eup %3321 }
0x102f   :  { %v1731_v50 = vsel %vm206_vm2, %v3322_v40, 0.0 }
0x1039   :  { %1954 = vrot.lane.b32.xlu1 %v4040_v32, %s3508_s22 }
0x1042   :  { %2003 = vrot.lane.b32.xlu0 %v4045_v33, %s3508_s22 }
0x1046   :  { %2101 = vrot.lane.b32.xlu0 %v4050_v17, %s3508_s22 }
0x1050   :  { %v1724_v36 = vpop.xlane.xlu0 %1723 }
0x1051   :  { %3323 = vrcp.f32 %v1724_v36 }
0x1054   :  { %v1891_v8 = vpop.permute.xlu0 %1890 }
0x1055   :  { %v1896_v51 = vsel %vm450_vm3, %v1891_v8, 0 }
0x105b   :  { %v3324_v41 = vpop.eup %3323 }
0x105c   :  { %v1738_v42 = vmul.f32 %v3324_v41, %v3316_v25 }
0x105d   :  { %1732 = vadd.xlane.f32.xlu1 %v1731_v50 }
0x105e   :  { %v1742_v43 = vpack.c.bf16 %v1738_v42, %v1738_v42 }
0x1060   :  { %3110 = vmatmul.mubr.msk.bf16.vlgmr.msra.gmra.mrb[48].mxu0 %vm206_vm2, %v1742_v43 }
0x1061   :  { %3120 = vmatpush3.bf16.msra.mxu0 %v1848_v54  ;;  %3121 = vmatprep.mubr.msk.bf16.mxu0 %vm3505_vm0, %v3504_v0 }
0x1062   :  { %3131 = vmatprep.subr.bf16.mxu0 %v3504_v0 }
0x106e   :  { %2052 = vrot.lane.b32.xlu1 %v4061_v38, %s3508_s22 }
0x10b5   :  { %v1727_v44 = vpop.xlane.xlu1 %1726 }
0x10b6   :  { %3325 = vrcp.f32 %v1727_v44 }
0x10b9   :  { %v1730_v7 = vpop.xlane.xlu0 %1729  ;;  %v1955_v53 = vpop.permute.xlu1 %1954 }
0x10ba   :  { %3327 = vrcp.f32 %v1730_v7  ;;  %v1960_v55 = vsel %vm206_vm2, %v1955_v53, 0 }
0x10bd   :  { %v2004_v61 = vpop.permute.xlu0 %2003 }
0x10be   :  { %v2009_v63 = vsel %vm206_vm2, %v2004_v61, 0 }
0x10c0   :  { %v3326_v45 = vpop.eup %3325 }
0x10c1   :  { %v1739_v47 = vmul.f32 %v3326_v45, %v3318_v26  ;;  %v2102_v14 = vpop.permute.xlu0 %2101 }
0x10c2   :  { %v2107_v1 = vsel %vm206_vm2, %v2102_v14, 0 }
0x10c3   :  { %v1743_v48 = vpack.c.bf16 %v1739_v47, %v1739_v47 }
0x10c4   :  { %v3328_v49 = vpop.eup %3327 }
0x10c5   :  { %v1740_v52 = vmul.f32 %v3328_v49, %v3320_v30  ;;  %3116 = vmatmul.mubr.msk.bf16.vlgmr.msra.gmra.mrb[52].mxu1 %vm206_vm2, %v1743_v48 }
0x10c6   :  { %3126 = vmatpush3.bf16.msra.mxu1 %v1896_v51  ;;  %3127 = vmatprep.mubr.msk.bf16.mxu1 %vm3505_vm0, %v3504_v0 }
0x10c7   :  { %v1744_v37 = vpack.c.bf16 %v1740_v52, %v1740_v52  ;;  %3137 = vmatprep.subr.bf16.mxu1 %v3504_v0 }
0x10c9   :  { %3122 = vmatmul.mubr.msk.bf16.vlgmr.msra.gmra.mrb[52].mxu0 %vm206_vm2, %v1744_v37 }
0x10ca   :  { %3132 = vmatpush3.bf16.xpose.msra.mxu0 %v1960_v55  ;;  %3133 = vmatprep.mubr.msk.bf16.mxu0 %vm3505_vm0, %v3504_v0 }
0x10cb   :  { %3143 = vmatprep.subr.bf16.mxu0 %v3504_v0 }
0x10d1   :  { %3134 = vmatmul.mubr.msk.bf16.vlgmr.msra.gmra.mrb[56].mxu0 %vm206_vm2, %v4040_v32 }
0x10d2   :  { %3145 = vmatprep.mubr.msk.bf16.mxu0 %vm3505_vm0, %v3504_v0 }
0x10ea   :  { %v1733_v46 = vpop.xlane.xlu1 %1732 }
0x10eb   :  { %3329 = vrcp.f32 %v1733_v46 }
0x10ee   :  { %v2053_v56 = vpop.permute.xlu1 %2052 }
0x10ef   :  { %v2058_v57 = vsel %vm206_vm2, %v2053_v56, 0 }
0x10f0   :  { %3144 = vmatpush3.bf16.xpose.msra.mxu0 %v2058_v57 }
0x10f1   :  { %3155 = vmatprep.subr.bf16.mxu0 %v3504_v0 }
0x10f5   :  { %v3330_v59 = vpop.eup %3329 }
0x10f6   :  { %v1741_v60 = vmul.f32 %v3330_v59, %v3322_v40 }
0x10f7   :  { %3146 = vmatmul.mubr.msk.bf16.vlgmr.msra.gmra.mrb[60].mxu0 %vm206_vm2, %v4061_v38 }
0x10f8   :  { %v1745_v62 = vpack.c.bf16 %v1741_v60, %v1741_v60  ;;  %3157 = vmatprep.mubr.msk.bf16.mxu0 %vm3505_vm0, %v3504_v0 }
0x10fa   :  { %3128 = vmatmul.mubr.msk.bf16.vlgmr.msra.gmra.mrb[56].mxu1 %vm206_vm2, %v1745_v62 }
0x10fb   :  { %3138 = vmatpush3.bf16.xpose.msra.mxu1 %v2009_v63  ;;  %3139 = vmatprep.mubr.msk.bf16.mxu1 %vm3505_vm0, %v3504_v0 }
0x10fc   :  { %3149 = vmatprep.subr.bf16.mxu1 %v3504_v0 }
0x1102   :  { %3140 = vmatmul.mubr.msk.bf16.vlgmr.msra.gmra.mrb[60].mxu1 %vm206_vm2, %v4045_v33 }
0x1103   :  { %3150 = vmatpush3.bf16.xpose.msra.mxu1 %v2107_v1  ;;  %3151 = vmatprep.mubr.msk.bf16.mxu1 %vm3505_vm0, %v3504_v0 }
0x1104   :  { %3161 = vmatprep.subr.bf16.mxu1 %v3504_v0 }
0x110a   :  { %3152 = vmatmul.mubr.msk.bf16.vlgmr.msra.gmra.mrb[64].mxu1 %vm206_vm2, %v4050_v17 }
0x110b   :  { %3163 = vmatprep.mubr.msk.bf16.mxu1 %vm3505_vm0, %v3504_v0 }
0x1133   :  { %v4100_v2 = vpop.f32.mrb[48].mxu0 }
0x1134   :  { %v3111_v11 = vpop.f32.mrb[49].mxu0 }
0x1135   :  { %v1791_v5 = vpop.f32.mrb[50].mxu0 }
0x1136   :  { %v3112_v6 = vpop.f32.mrb[51].mxu0 }
0x1198   :  { %v4102_v10 = vpop.f32.mrb[52].mxu1 }
0x1199   :  { %v3117_v12 = vpop.f32.mrb[53].mxu1 }
0x119a   :  { %v1839_v16 = vpop.f32.mrb[54].mxu1 }
0x119b   :  { %v3118_v13 = vpop.f32.mrb[55].mxu1 }
0x119c   :  { %v4104_v18 = vpop.f32.mrb[52].mxu0 }
0x119d   :  { %v3123_v25 = vpop.f32.mrb[53].mxu0 }
0x119e   :  { %v1887_v3 = vpop.f32.mrb[54].mxu0 }
0x119f   :  { %v3124_v4 = vpop.f32.mrb[55].mxu0 }
0x11a4   :  { %v1996_v19 = vpop.f32.mrb[56].mxu0 }
0x11a5   :  { %v1997_v20 = vadd.f32 %v3833_v58, %v1996_v19  ;;  %v3135_v15 = vpop.f32.mrb[57].mxu0 }
0x11a6   :  { %v1999_v21 = vpop.f32.mrb[58].mxu0 }
0x11a7   :  { %v3136_v22 = vpop.f32.mrb[59].mxu0  ;;  %v2149_v23 = vsel %vm206_vm2, %v1997_v20, -inf }
0x11a8   :  { %2150 = vmax.xlane.f32.xlu1 %v2149_v23 }
0x11ca   :  { %v2094_v24 = vpop.f32.mrb[60].mxu0 }
0x11cb   :  { %v3147_v26 = vpop.f32.mrb[61].mxu0  ;;  %v2095_v50 = vadd.f32 %v3833_v58, %v2094_v24 }
0x11cc   :  { %v2097_v29 = vpop.f32.mrb[62].mxu0 }
0x11cd   :  { %v4108_v30 = vpop.f32.mrb[56].mxu1  ;;  %v3148_v31 = vpop.f32.mrb[63].mxu0  ;;  %v2155_v54 = vsel %vm206_vm2, %v2095_v50, -inf }
0x11ce   :  { %v3129_v34 = vpop.f32.mrb[57].mxu1 }
0x11cf   :  { %v1935_v35 = vpop.f32.mrb[58].mxu1 }
0x11d0   :  { %v3130_v39 = vpop.f32.mrb[59].mxu1 }
0x11d5   :  { %v2045_v36 = vpop.f32.mrb[60].mxu1 }
0x11d6   :  { %v2046_v40 = vadd.f32 %v3833_v58, %v2045_v36  ;;  %v3141_v41 = vpop.f32.mrb[61].mxu1 }
0x11d7   :  { %v2048_v42 = vpop.f32.mrb[62].mxu1 }
0x11d8   :  { %v3142_v9 = vpop.f32.mrb[63].mxu1  ;;  %v2152_v43 = vsel %vm206_vm2, %v2046_v40, -inf }
0x11d9   :  { %2153 = vmax.xlane.f32.xlu0 %v2152_v43  ;;  %v3267_v9 = vld [vmem:[%s4236_s4 + $0x10] sm:$0xff]   ;;  %v3268_v43 = vld [vmem:[%s4236_s4 + $0x18] sm:$0xff]  }
0x11dd   :  { %2156 = vmax.xlane.f32.xlu0 %v2155_v54  ;;  %v2143_v8 = vpop.f32.mrb[64].mxu1 }
0x11de   :  { %v2144_v44 = vadd.f32 %v3833_v58, %v2143_v8  ;;  %v3153_v7 = vpop.f32.mrb[65].mxu1 }
0x11df   :  { %v2146_v45 = vpop.f32.mrb[66].mxu1 }
0x11e0   :  { %v3154_v47 = vpop.f32.mrb[67].mxu1  ;;  %v2158_v48 = vsel %vm206_vm2, %v2144_v44, -inf }
0x11e1   :  { %2159 = vmax.xlane.f32.xlu1 %v2158_v48 }
0x11f2   :  { %2245 = vrot.lane.b32.xlu1 %v4045_v33, %s3510_s29 }
0x11f3   :  { %2197 = vrot.lane.b32.xlu0 %v4040_v32, %s3510_s29 }
0x1235   :  { %v2151_v49 = vpop.xlane.xlu1 %2150 }
0x1236   :  { %v2161_v51 = vsub.f32 %v1997_v20, %v2151_v49 }
0x1238   :  { %v2165_v52 = vmul.f32 1.442695, %v2161_v51 }
0x123a   :  { %3331 = vpow2.f32 %v2165_v52 }
0x1244   :  { %v3332_v53 = vpop.eup %3331 }
0x1245   :  { %v2173_v37 = vsel %vm206_vm2, %v3332_v53, 0.0 }
0x1246   :  { %2174 = vadd.xlane.f32.xlu0 %v2173_v37 }
0x1266   :  { %v2154_v58 = vpop.xlane.xlu0 %2153 }
0x1267   :  { %v2162_v55 = vsub.f32 %v2046_v40, %v2154_v58 }
0x1269   :  { %v2167_v46 = vmul.f32 1.442695, %v2162_v55 }
0x126a   :  { %v2157_v56 = vpop.xlane.xlu0 %2156 }
0x126b   :  { %3333 = vpow2.f32 %v2167_v46  ;;  %v2163_v57 = vsub.f32 %v2095_v50, %v2157_v56 }
0x126d   :  { %v2169_v59 = vmul.f32 1.442695, %v2163_v57 }
0x126e   :  { %v2198_v60 = vpop.permute.xlu0 %2197  ;;  %v2160_v33 = vpop.xlane.xlu1 %2159 }
0x126f   :  { %3335 = vpow2.f32 %v2169_v59  ;;  %v2203_v32 = vsel %vm450_vm3, %v2198_v60, 0  ;;  %v2164_v61 = vsub.f32 %v2144_v44, %v2160_v33 }
0x1270   :  { %3156 = vmatpush3.bf16.msra.mxu0 %v2203_v32 }
0x1271   :  { %v2171_v62 = vmul.f32 1.442695, %v2164_v61  ;;  %3167 = vmatprep.subr.bf16.mxu0 %v3504_v0 }
0x1272   :  { %v2246_v63 = vpop.permute.xlu1 %2245 }
0x1273   :  { %3337 = vpow2.f32 %v2171_v62  ;;  %v2251_v14 = vsel %vm450_vm3, %v2246_v63, 0 }
0x1274   :  { %3162 = vmatpush3.bf16.msra.mxu1 %v2251_v14 }
0x1275   :  { %v3334_v1 = vpop.eup %3333  ;;  %3173 = vmatprep.subr.bf16.mxu1 %v3504_v0 }
0x1276   :  { %v2176_v11 = vsel %vm206_vm2, %v3334_v1, 0.0 }
0x1277   :  { %2177 = vadd.xlane.f32.xlu1 %v2176_v11 }
0x1279   :  { %v3336_v5 = vpop.eup %3335 }
0x127a   :  { %v2179_v6 = vsel %vm206_vm2, %v3336_v5, 0.0 }
0x127b   :  { %2180 = vadd.xlane.f32.xlu0 %v2179_v6  ;;  %v2818_v6 = vld [vmem:[#allocation5 + $0x1] ss:$0 sm:$0xff] }
0x127d   :  { %v3338_v12 = vpop.eup %3337 }
0x127e   :  { %v2182_v16 = vsel %vm206_vm2, %v3338_v12, 0.0 }
0x127f   :  { %2183 = vadd.xlane.f32.xlu1 %v2182_v16 }
0x1290   :  { %2293 = vrot.lane.b32.xlu1 %v4061_v38, %s3510_s29 }
0x1291   :  { %2341 = vrot.lane.b32.xlu0 %v4050_v17, %s3510_s29 }
0x12d3   :  { %v2175_v13 = vpop.xlane.xlu0 %2174 }
0x12d4   :  { %3339 = vrcp.f32 %v2175_v13 }
0x12de   :  { %v3340_v25 = vpop.eup %3339 }
0x12df   :  { %v2189_v3 = vmul.f32 %v3340_v25, %v3332_v53 }
0x12e1   :  { %v2193_v4 = vpack.c.bf16 %v2189_v3, %v2189_v3 }
0x12e3   :  { %3158 = vmatmul.mubr.msk.bf16.vlgmr.msra.gmra.mrb[64].mxu0 %vm206_vm2, %v2193_v4 }
0x12e4   :  { %3169 = vmatprep.mubr.msk.bf16.mxu0 %vm3505_vm0, %v3504_v0 }
0x1304   :  { %v2178_v19 = vpop.xlane.xlu1 %2177 }
0x1305   :  { %3341 = vrcp.f32 %v2178_v19 }
0x1308   :  { %v2181_v20 = vpop.xlane.xlu0 %2180 }
0x1309   :  { %3343 = vrcp.f32 %v2181_v20 }
0x130c   :  { %v2184_v15 = vpop.xlane.xlu1 %2183  ;;  %v2342_v17 = vpop.permute.xlu0 %2341 }
0x130d   :  { %3345 = vrcp.f32 %v2184_v15  ;;  %v2347_v31 = vsel %vm450_vm3, %v2342_v17, 0 }
0x130f   :  { %v3342_v38 = vpop.eup %3341 }
0x1310   :  { %v2190_v21 = vmul.f32 %v3342_v38, %v3334_v1  ;;  %v2294_v22 = vpop.permute.xlu1 %2293 }
0x1311   :  { %v2299_v23 = vsel %vm450_vm3, %v2294_v22, 0 }
0x1312   :  { %3168 = vmatpush3.bf16.msra.mxu0 %v2299_v23  ;;  %v2194_v24 = vpack.c.bf16 %v2190_v21, %v2190_v21 }
0x1313   :  { %v3344_v26 = vpop.eup %3343  ;;  %3179 = vmatprep.subr.bf16.mxu0 %v3504_v0 }
0x1314   :  { %v2191_v29 = vmul.f32 %v3344_v26, %v3336_v5  ;;  %3164 = vmatmul.mubr.msk.bf16.vlgmr.msra.gmra.mrb[68].mxu1 %vm206_vm2, %v2194_v24 }
0x1315   :  { %3174 = vmatpush3.bf16.msra.mxu1 %v2347_v31  ;;  %3175 = vmatprep.mubr.msk.bf16.mxu1 %vm3505_vm0, %v3504_v0 }
0x1316   :  { %v2195_v34 = vpack.c.bf16 %v2191_v29, %v2191_v29  ;;  %3187 = vmatprep.subr.bf16.mxu1 %v3504_v0 }
0x1317   :  { %v3346_v35 = vpop.eup %3345 }
0x1318   :  { %v2192_v39 = vmul.f32 %v3346_v35, %v3338_v12  ;;  %3170 = vmatmul.mubr.msk.bf16.vlgmr.msra.gmra.mrb[68].mxu0 %vm206_vm2, %v2195_v34  ;;  %v3270_v34 = vld [vmem:[%s4240_s8 + $0x18] sm:$0xff]   ;;  %v3271_v35 = vld [vmem:[%s4242_s10 + $0x20] sm:$0xff]  }
0x1319   :  { %3183 = vmatprep.mubr.msk.bf16.mxu0 %vm3505_vm0, %v3504_v0  ;;  %3180 = vmatpush3.bf16.msra.mxu0 %v3267_v9 }
0x131a   :  { %v2196_v36 = vpack.c.bf16 %v2192_v39, %v2192_v39  ;;  %3181 = vmatprep.subr.bf16.mxu0 %v3504_v0  ;;  %v3272_v39 = vld [vmem:[%s4242_s10 + $0x28] sm:$0xff]  }
0x131c   :  { %3176 = vmatmul.mubr.msk.bf16.vlgmr.msra.gmra.mrb[72].mxu1 %vm206_vm2, %v2196_v36 }
0x131d   :  { %3191 = vmatprep.mubr.msk.bf16.mxu1 %vm3505_vm0, %v3504_v0  ;;  %3182 = vmatpush3.bf16.msra.mxu0 %v3268_v43 }
0x131e   :  { %3195 = vmatprep.subr.bf16.mxu0 %v3504_v0 }
0x13b6   :  { %v2239_v40 = vpop.f32.mrb[64].mxu0 }
0x13b7   :  { %v3159_v41 = vpop.f32.mrb[65].mxu0 }
0x13b8   :  { %v2242_v42 = vpop.f32.mrb[66].mxu0 }
0x13b9   :  { %v3160_v50 = vpop.f32.mrb[67].mxu0 }
0x13e7   :  { %v2287_v54 = vpop.f32.mrb[68].mxu1 }
0x13e8   :  { %v3240_v8 = vpack.i.bf16 %v2287_v54, %v4102_v10  ;;  %v3165_v44 = vpop.f32.mrb[69].mxu1 }
0x13e9   :  { %v2290_v7 = vpop.f32.mrb[70].mxu1 }
0x13ea   :  { %3241 = vrot.lane.b32.xlu1 %v3240_v8, %s3501_s28  ;;  %v3166_v45 = vpop.f32.mrb[71].mxu1  ;;  %v2822_v8 = vld [vmem:[#allocation7 + $0x1] ss:$0 sm:$0xff] }
0x13eb   :  { %v2335_v47 = vpop.f32.mrb[68].mxu0 }
0x13ec   :  { %v3245_v48 = vpack.i.bf16 %v2335_v47, %v4104_v18  ;;  %v3171_v49 = vpop.f32.mrb[69].mxu0  ;;  %v2823_v47 = vld [vmem:[#allocation8 + $0x1] ss:$0 sm:$0xff] }
0x13ed   :  { %v2338_v51 = vpop.f32.mrb[70].mxu0 }
0x13ee   :  { %3246 = vrot.lane.b32.xlu0 %v3245_v48, %s3496_s23  ;;  %v3172_v52 = vpop.f32.mrb[71].mxu0 }
0x13ef   :  { %v2383_v53 = vpop.f32.mrb[72].mxu1 }
0x13f0   :  { %v3250_v37 = vpack.i.bf16 %v2383_v53, %v4108_v30  ;;  %v3177_v10 = vpop.f32.mrb[73].mxu1  ;;  %v3273_v53 = vld [vmem:[%s4242_s10 + $0x30] sm:$0xff]  }
0x13f1   :  { %v2386_v58 = vpop.f32.mrb[74].mxu1  ;;  %v2828_v10 = vld [vmem:[#allocation10 + $0x1] ss:$0 sm:$0xff] }
0x13f2   :  { %3251 = vrot.lane.b32.xlu1 %v3250_v37, %s3511_s19  ;;  %v3178_v55 = vpop.f32.mrb[75].mxu1  ;;  %v3274_v37 = vld [vmem:[%s4242_s10 + $0x38] sm:$0xff]  }
0x145c   :  { %v3242_v46 = vpop.permute.xlu1 %3241 }
0x145d   :  { %v3244_v57 = vunpack.i.h.bf16 %v3242_v46  ;;  %v3243_v59 = vunpack.i.l.bf16 %v3242_v46 }
0x145f   :  { %v2401_v32 = vsel %vm206_vm2, %v2239_v40, %v3244_v57  ;;  %v1950_v61 = vsel %vm206_vm2, %v4100_v2, %v3243_v59 }
0x1460   :  { %v3247_v56 = vpop.permute.xlu0 %3246 }
0x1461   :  { %v3249_v60 = vunpack.i.h.bf16 %v3247_v56  ;;  %v3248_v33 = vunpack.i.l.bf16 %v3247_v56 }
0x1463   :  { %v1951_v30 = vsel %vm651_vm4, %v1950_v61, %v3248_v33  ;;  %v2402_v14 = vsel %vm651_vm4, %v2401_v32, %v3249_v60 }
0x1464   :  { %v3252_v18 = vpop.permute.xlu1 %3251 }
0x1465   :  { %v3254_v62 = vunpack.i.h.bf16 %v3252_v18  ;;  %v3253_v63 = vunpack.i.l.bf16 %v3252_v18 }
0x1467   :  { %v2403_v1 = vsel %vm653_vm5, %v2402_v14, %v3254_v62  ;;  %v1952_v11 = vsel %vm653_vm5, %v1951_v30, %v3253_v63 }
0x1468   :  { %v2404_v5 = vpack.c.bf16 %v2403_v1, %v1952_v11 }
0x146a   :  { %3184 = vmatmul.mubr.msk.bf16.vlgmr.msra.gmra.mrb[72].mxu0 %vm145_vm1, %v2404_v5 }
0x146b   :  { %3203 = vmatprep.mubr.msk.bf16.mxu0 %vm3505_vm0, %v3504_v0  ;;  %3196 = vmatpush3.bf16.msra.mxu0 %v3271_v35 }
0x146c   :  { %3197 = vmatprep.subr.bf16.mxu0 %v3504_v0 }
0x146f   :  { %3198 = vmatpush3.bf16.msra.mxu0 %v3272_v39 }
0x1470   :  { %3199 = vmatprep.subr.bf16.mxu0 %v3504_v0 }
0x1473   :  { %3200 = vmatpush3.bf16.msra.mxu0 %v3273_v53 }
0x1474   :  { %3201 = vmatprep.subr.bf16.mxu0 %v3504_v0 }
0x1477   :  { %3202 = vmatpush3.bf16.msra.mxu0 %v3274_v37 }
0x153d   :  { %v2467_v12 = vpop.f32.mrb[72].mxu0 }
0x153e   :  { %v2468_v16 = vadd.f32 %v2818_v6, %v2467_v12  ;;  %v3185_v2 = vpop.f32.mrb[73].mxu0 }
0x153f   :  { %v2470_v13 = vpop.f32.mrb[74].mxu0 }
0x1540   :  { %v2471_v25 = vadd.f32 %v2818_v6, %v2470_v13  ;;  %v3186_v3 = vpop.f32.mrb[75].mxu0  ;;  %v2474_v4 = vadd.f32 %v2468_v16, %v3958_v27 }
0x1542   :  { %v2480_v19 = vsel %vm145_vm1, %v2474_v4, 0.0  ;;  %v2475_v20 = vadd.f32 %v2471_v25, %v3960_v28  ;;  %v3269_v28 = vld [vmem:[%s4240_s8 + $0x10] sm:$0xff]  }
0x1543   :  { %2481 = vadd.xlane.f32.xlu0 %v2480_v19  ;;  %3188 = vmatpush3.bf16.msra.mxu1 %v3269_v28  ;;  %v2850_v28 = vld [vmem:[%s4245_s13 + $0x1] ss:$0 sm:$0xff] }
0x1544   :  { %v2483_v15 = vsel %vm145_vm1, %v2475_v20, 0.0  ;;  %3189 = vmatprep.subr.bf16.mxu1 %v3504_v0  ;;  %v2841_v0 = vld [vmem:[%s4243_s11 + $0x1] ss:$0 sm:$0xff] }
0x1545   :  { %2484 = vadd.xlane.f32.xlu1 %v2483_v15 }
0x1547   :  { %3190 = vmatpush3.bf16.msra.mxu1 %v3270_v34 }
0x15d0   :  { %v2482_v38 = vpop.xlane.xlu0 %2481 }
0x15d1   :  { %v2486_v21 = vmul.f32 0.03125, %v2482_v38 }
0x15d2   :  { %v2485_v22 = vpop.xlane.xlu1 %2484 }
0x15d3   :  { %v2488_v17 = vsub.f32 %v2474_v4, %v2486_v21  ;;  %v2487_v23 = vmul.f32 0.03125, %v2485_v22 }
0x15d5   :  { %v2489_v24 = vsub.f32 %v2475_v20, %v2487_v23  ;;  %v2490_v26 = vmul.f32 %v2488_v17, %v2488_v17 }
0x15d7   :  { %v2492_v29 = vsel %vm145_vm1, %v2490_v26, 0.0  ;;  %v2491_v31 = vmul.f32 %v2489_v24, %v2489_v24 }
0x15d8   :  { %2493 = vadd.xlane.f32.xlu0 %v2492_v29  ;;  %v2849_v29 = vld [vmem:[%s4244_s12 + $0x1] ss:$0 sm:$0xff] }
0x15d9   :  { %v2495_v27 = vsel %vm145_vm1, %v2491_v31, 0.0 }
0x15dc   :  { %2496 = vadd.xlane.f32.xlu0 %v2495_v27 }
0x1665   :  { %v2494_v36 = vpop.xlane.xlu0 %2493 }
0x1666   :  { %v2498_v40 = vmul.f32 0.03125, %v2494_v36 }
0x1668   :  { %v2500_v41 = vadd.f32 1e-05, %v2498_v40 }
0x1669   :  { %v2497_v42 = vpop.xlane.xlu0 %2496 }
0x166a   :  { %3347 = vrsqrt.f32 %v2500_v41  ;;  %v2499_v50 = vmul.f32 0.03125, %v2497_v42 }
0x166c   :  { %v2501_v9 = vadd.f32 1e-05, %v2499_v50 }
0x166e   :  { %3349 = vrsqrt.f32 %v2501_v9 }
0x1674   :  { %v3348_v43 = vpop.eup %3347 }
0x1675   :  { %v2504_v54 = vmul.f32 %v3348_v43, %v2488_v17 }
0x1677   :  { %v2512_v7 = vmul.f32 %v2822_v8, %v2504_v54 }
0x1678   :  { %v3350_v44 = vpop.eup %3349 }
0x1679   :  { %v2505_v45 = vmul.f32 %v3350_v44, %v2489_v24  ;;  %v2520_v49 = vadd.f32 %v2823_v47, %v2512_v7 }
0x167b   :  { %v2513_v48 = vmul.f32 %v2822_v8, %v2505_v45 }
0x167d   :  { %v2521_v51 = vadd.f32 %v2823_v47, %v2513_v48 }
0x167f   :  { %v2522_v52 = vpack.c.bf16 %v2521_v51, %v2520_v49 }
0x1681   :  { %3192 = vmatmul.mubr.msk.bf16.vlgmr.msra.gmra.mrb[76].mxu1 %vm145_vm1, %v2522_v52 }
0x1754   :  { %v2585_v58 = vpop.f32.mrb[76].mxu1 }
0x1755   :  { %v2586_v55 = vadd.f32 %v2828_v10, %v2585_v58  ;;  %v3193_v46 = vpop.f32.mrb[77].mxu1 }
0x1756   :  { %v2588_v56 = vpop.f32.mrb[78].mxu1 }
0x1757   :  { %v2589_v57 = vadd.f32 %v2828_v10, %v2588_v56  ;;  %v3194_v59 = vpop.f32.mrb[79].mxu1  ;;  %v2592_v60 = vmax.f32 %v2586_v55, 0.0 }
0x1759   :  { %v2593_v33 = vmax.f32 %v2589_v57, 0.0 }
0x175b   :  { %v2594_v18 = vpack.c.bf16 %v2593_v33, %v2592_v60 }
0x175d   :  { %3204 = vmatmul.mubr.msk.bf16.vlgmr.msra.gmra.mrb[76].mxu0 %vm1337_vm6, %v2594_v18 }
0x1830   :  { %v2673_v32 = vpop.f32.mrb[76].mxu0 }
0x1831   :  { %v2674_v61 = vadd.f32 %v2841_v0, %v2673_v32  ;;  %v3205_v62 = vpop.f32.mrb[77].mxu0 }
0x1832   :  { %v2676_v63 = vpop.f32.mrb[78].mxu0 }
0x1833   :  { %v2677_v30 = vadd.f32 %v2841_v0, %v2676_v63  ;;  %v3206_v14 = vpop.f32.mrb[79].mxu0  ;;  %v2680_v1 = vadd.f32 %v2674_v61, %v2520_v49 }
0x1835   :  { %v2686_v11 = vsel %vm145_vm1, %v2680_v1, 0.0  ;;  %v2681_v5 = vadd.f32 %v2677_v30, %v2521_v51 }
0x1836   :  { %2687 = vadd.xlane.f32.xlu1 %v2686_v11 }
0x1837   :  { %v2689_v6 = vsel %vm145_vm1, %v2681_v5, 0.0 }
0x1838   :  { %2690 = vadd.xlane.f32.xlu0 %v2689_v6 }
0x18c3   :  { %v2688_v12 = vpop.xlane.xlu1 %2687 }
0x18c4   :  { %v2692_v16 = vmul.f32 0.03125, %v2688_v12 }
0x18c5   :  { %v2691_v2 = vpop.xlane.xlu0 %2690 }
0x18c6   :  { %v2694_v13 = vsub.f32 %v2680_v1, %v2692_v16  ;;  %v2693_v25 = vmul.f32 0.03125, %v2691_v2 }
0x18c8   :  { %v2695_v3 = vsub.f32 %v2681_v5, %v2693_v25  ;;  %v2696_v4 = vmul.f32 %v2694_v13, %v2694_v13 }
0x18ca   :  { %v2698_v19 = vsel %vm145_vm1, %v2696_v4, 0.0  ;;  %v2697_v20 = vmul.f32 %v2695_v3, %v2695_v3 }
0x18cb   :  { %2699 = vadd.xlane.f32.xlu1 %v2698_v19 }
0x18cc   :  { %v2701_v15 = vsel %vm145_vm1, %v2697_v20, 0.0 }
0x18cd   :  { %2702 = vadd.xlane.f32.xlu0 %v2701_v15 }
0x1958   :  { %v2700_v38 = vpop.xlane.xlu1 %2699 }
0x1959   :  { %v2704_v21 = vmul.f32 0.03125, %v2700_v38 }
0x195a   :  { %v2703_v22 = vpop.xlane.xlu0 %2702 }
0x195b   :  { %v2706_v17 = vadd.f32 1e-05, %v2704_v21  ;;  %v2705_v23 = vmul.f32 0.03125, %v2703_v22 }
0x195d   :  { %3351 = vrsqrt.f32 %v2706_v17  ;;  %v2707_v24 = vadd.f32 1e-05, %v2705_v23 }
0x195f   :  { %3353 = vrsqrt.f32 %v2707_v24 }
0x1967   :  { %v3352_v26 = vpop.eup %3351 }
0x1968   :  { %v2710_v31 = vmul.f32 %v3352_v26, %v2694_v13 }
0x1969   :  { %v3354_v27 = vpop.eup %3353 }
0x196a   :  { %v2711_v34 = vmul.f32 %v3354_v27, %v2695_v3  ;;  %v2718_v35 = vmul.f32 %v2849_v29, %v2710_v31 }
0x196c   :  { %v2719_v39 = vmul.f32 %v2849_v29, %v2711_v34  ;;  %v2726_v36 = vadd.f32 %v2850_v28, %v2718_v35 }
0x196e   :  { %v2727_v40 = vadd.f32 %v2850_v28, %v2719_v39  ;;  %2728 = vst.msk [vmem:[#allocation11] sm:$0xff] %vm145_vm1, %v2726_v36 }
0x1970   :  { %2729 = vst.msk [vmem:[#allocation11 + $0x8] sm:$0xff] %vm145_vm1, %v2727_v40 }
0x1971   :  { %3476 = shalt.err (!%p3473_p2)
}
0x1972   :  { %s3477_s1 = scalar_lea.hbm %s4246_s14, 256 }
0x1973   :  { %p3478_p3 = scmp.ne.s32.totalorder %s4246_s14, %s3477_s1  ;;  %p3481_p4 = scmp.lt.u32.totalorder %s3477_s1, %s4246_s14 }
0x1975   :  { %p3483_p5 = pnand %p3481_p4, %p3478_p3 }
0x1977   :  { %3486 = shalt.err (!%p3483_p5)
}
0x1978   :  { %2741 = dma.vmem_to_hbm [thread:$0]  %s2736_s16, 256, %s4246_s14, [#allocation4], %s3500_s7, %s3500_s7, %s3501_s28  }
0x1979   :  { %3493 = dma.done.wait [#allocation4], 256  }
0x197a   :  { %3494 = vsyncadd [#allocation4], 4294967040 }
0x197b   :  { %2745 = vsyncpa [#allocation3], 1 }
0x197c   :  { %2746 = vsyncpa [#allocation6], 1 }
0x197d   :  { %2747 = vsyncpa [#allocation9], 1 }
0x197e   :  { %2748 = vsyncpa [#allocation4], 1 }

</bundles_post_ra>
